<compile_context>
chip_gen: v7x
topology: tpu7x:2x2x1
jax: 0.10.0
libtpu: 0.0.40
codegen_flags: <defaults>
</compile_context>

<pallas_src>
import functools

import jax
import jax.numpy as jnp
import numpy as np
from jax.experimental import pallas as pl
from jax.experimental.pallas import tpu as pltpu


def _mha_kernel(q_ref, k_ref, v_ref, wq_ref, wfc_ref, gamma_ref, beta_ref,
                out_ref, *rest, n_groups, group, d_k, eps, compute_dtype,
                return_attn):
    """One (batch, q-block, head-group) grid step.

    The output block is revisited across the innermost ("arbitrary") group
    axis: an f32 VMEM accumulator is seeded with the residual at g == 0 and
    the output block is written exactly once at the last group step.
    """
    if return_attn:
        attn_ref = rest[0]
        qn_sc, acc_sc = rest[1], rest[2]
    else:
        attn_ref = None
        qn_sc, acc_sc = rest[0], rest[1]

    f32 = jnp.float32
    g = pl.program_id(2)

    # ---- once per (b, q-block): LayerNorm + residual seed ----
    @pl.when(g == 0)
    def _():
        q_in = q_ref[0].astype(f32)                                # (tq, D)
        mean = jnp.mean(q_in, axis=-1, keepdims=True)
        centered = q_in - mean
        var = jnp.mean(centered * centered, axis=-1, keepdims=True)  # biased
        qn = centered * jax.lax.rsqrt(var + eps)
        qn = qn * gamma_ref[...].astype(f32) + beta_ref[...].astype(f32)
        qn_sc[...] = qn.astype(compute_dtype)      # cached LN(q), bf16
        acc_sc[...] = q_in                          # residual seed, f32

    qn_c = qn_sc[...]                               # (tq, D) bf16

    # ---- grouped Q projection: one wide MXU GEMM (1/sqrt(d_k) pre-folded) --
    wq_g = wq_ref[g]                                # (D, G*d_k) bf16, resident
    q_grp = jnp.dot(qn_c, wq_g, preferred_element_type=f32)   # (tq, G*d_k)
    q_grp = q_grp.astype(compute_dtype)

    wfc_g = wfc_ref[g]                              # (G, d_v, D) bf16, resident

    contrib = jnp.zeros(acc_sc.shape, dtype=f32)    # (tq, D)
    for hh in range(group):                         # static, unrolled
        q_h = q_grp[:, hh * d_k:(hh + 1) * d_k]     # (tq, d_k) bf16
        k_h = k_ref[0, hh]                          # (Lk, d_k) bf16 (hoisted proj)
        v_h = v_ref[0, hh]                          # (Lv, d_v) bf16 (hoisted proj)

        # scores = q_h @ k_h^T (transpose folded into contraction dims)
        scores = jax.lax.dot_general(
            q_h, k_h, dimension_numbers=(((1,), (1,)), ((), ())),
            preferred_element_type=f32)             # (tq, Lk)

        # ---- softmax in f32; divide via EUP approximate reciprocal ----
        m = jnp.max(scores, axis=-1, keepdims=True)
        e = jnp.exp(scores - m)
        p = e * pl.reciprocal(jnp.sum(e, axis=-1, keepdims=True), approx=True)
        # TODO(synk): attention dropout (p=0.1) omitted -> eval-mode identity.

        if return_attn:
            attn_ref[0, hh] = p.astype(attn_ref.dtype)

        o_h = jnp.dot(p.astype(compute_dtype), v_h,
                      preferred_element_type=f32)   # (tq, d_v)
        contrib = contrib + jnp.dot(o_h.astype(compute_dtype), wfc_g[hh],
                                    preferred_element_type=f32)  # (tq, D)

    # TODO(synk): output dropout (p=0.1) omitted -> eval-mode identity.
    acc_sc[...] += contrib

    @pl.when(g == n_groups - 1)
    def _():
        out_ref[0] = acc_sc[...].astype(out_ref.dtype)


def _pick_tq(len_q, q_block):
    """Largest divisor of len_q that is <= q_block and a multiple of 8."""
    if len_q <= q_block:
        return len_q
    for t in range(q_block, 7, -1):
        if len_q % t == 0 and t % 8 == 0:
            return t
    return len_q


def _pick_head_group(n_head, d_k, target=256):
    """Largest divisor of n_head with group*d_k <= target (MXU width)."""
    g = 1
    for cand in range(1, n_head + 1):
        if n_head % cand == 0 and cand * d_k <= target:
            g = cand
    return g


def multi_head_attention(q, k, v, params, *, n_head, d_k, d_v,
                         return_attn=True, compute_dtype=jnp.bfloat16,
                         attn_dtype=jnp.float32, q_block=256,
                         head_group=None, vmem_limit_bytes=None):
    """q, k, v: (B, L, d_model) float32.  Returns (out, attn)."""
    sz_b, len_q, d_model = q.shape
    len_k = k.shape[1]
    len_v = v.shape[1]
    f32 = jnp.float32

    if head_group is None:
        head_group = _pick_head_group(n_head, d_k)
    assert n_head % head_group == 0
    group = head_group
    n_groups = n_head // group

    tq = _pick_tq(len_q, q_block)
    n_q_blocks = len_q // tq

    # ---- one-time host-side prep ----
    # Hoisted K/V projections (computed ONCE, not per q-block/head), handed to
    # the kernel as bf16 head-major slabs (B, H, L, d).
    k_proj = (jnp.einsum("bld,de->ble", k.astype(f32), params["wk"].astype(f32))
              .reshape(sz_b, len_k, n_head, d_k).transpose(0, 2, 1, 3)
              .astype(compute_dtype))
    v_proj = (jnp.einsum("bld,de->ble", v.astype(f32), params["wv"].astype(f32))
              .reshape(sz_b, len_v, n_head, d_v).transpose(0, 2, 1, 3)
              .astype(compute_dtype))

    # Wq with 1/sqrt(d_k) folded, grouped: (n_groups, D, G*d_k).
    inv_temp = 1.0 / (d_k ** 0.5)
    wq3 = ((params["wq"].astype(f32) * inv_temp)
           .reshape(d_model, n_groups, group * d_k).transpose(1, 0, 2)
           .astype(compute_dtype))
    # Wfc grouped: (n_groups, G, d_v, D).
    wfc3 = (params["wfc"].astype(f32)
            .reshape(n_groups, group, d_v, d_model).astype(compute_dtype))
    gamma = params["ln_gamma"].reshape(1, d_model).astype(f32)
    beta = params["ln_beta"].reshape(1, d_model).astype(f32)

    in_specs = [
        pl.BlockSpec((1, tq, d_model), lambda b, qi, g: (b, qi, 0)),       # q
        pl.BlockSpec((1, group, len_k, d_k), lambda b, qi, g: (b, g, 0, 0)),  # K_proj
        pl.BlockSpec((1, group, len_v, d_v), lambda b, qi, g: (b, g, 0, 0)),  # V_proj
        # Whole-array VMEM-resident weights (constant block index):
        pl.BlockSpec((n_groups, d_model, group * d_k),
                     lambda b, qi, g: (0, 0, 0)),                          # Wq
        pl.BlockSpec((n_groups, group, d_v, d_model),
                     lambda b, qi, g: (0, 0, 0, 0)),                       # Wfc
        pl.BlockSpec((1, d_model), lambda b, qi, g: (0, 0)),               # gamma
        pl.BlockSpec((1, d_model), lambda b, qi, g: (0, 0)),               # beta
    ]

    out_shape = [jax.ShapeDtypeStruct((sz_b, len_q, d_model), q.dtype)]
    out_specs = [pl.BlockSpec((1, tq, d_model), lambda b, qi, g: (b, qi, 0))]
    if return_attn:
        out_shape.append(
            jax.ShapeDtypeStruct((sz_b, n_head, len_q, len_k), attn_dtype))
        out_specs.append(
            pl.BlockSpec((1, group, tq, len_k), lambda b, qi, g: (b, g, qi, 0)))

    scratch_shapes = [
        pltpu.VMEM((tq, d_model), compute_dtype),   # cached LayerNorm(q)
        pltpu.VMEM((tq, d_model), jnp.float32),     # f32 output accumulator
    ]

    # VMEM budget derived from the actual blocks, clamped to physical VMEM.
    def _nbytes(shape, dtype):
        return int(np.prod(shape)) * jnp.dtype(dtype).itemsize

    if vmem_limit_bytes is None:
        est = 2 * (_nbytes((1, tq, d_model), q.dtype)
                   + _nbytes((1, group, len_k, d_k), compute_dtype)
                   + _nbytes((1, group, len_v, d_v), compute_dtype)
                   + _nbytes((1, tq, d_model), q.dtype))
        if return_attn:
            est += 2 * _nbytes((1, group, tq, len_k), attn_dtype)
        est += _nbytes(wq3.shape, compute_dtype) + _nbytes(wfc3.shape, compute_dtype)
        est += _nbytes((tq, d_model), compute_dtype)
        est += _nbytes((tq, d_model), jnp.float32)
        try:
            phys = pltpu.get_tpu_info().vmem_capacity_bytes
        except Exception:  # pragma: no cover - conservative v7x fallback
            phys = 64 << 20
        vmem_limit_bytes = int(min(max(2 * est + (16 << 20), 32 << 20),
                                   int(phys * 0.85)))

    kernel = functools.partial(
        _mha_kernel, n_groups=n_groups, group=group, d_k=d_k, eps=1e-6,
        compute_dtype=compute_dtype, return_attn=return_attn)

    results = pl.pallas_call(
        kernel,
        out_shape=tuple(out_shape),
        grid_spec=pltpu.PrefetchScalarGridSpec(
            num_scalar_prefetch=0,
            grid=(sz_b, n_q_blocks, n_groups),
            in_specs=in_specs,
            out_specs=tuple(out_specs),
            scratch_shapes=scratch_shapes,
        ),
        compiler_params=pltpu.CompilerParams(
            dimension_semantics=("parallel", "parallel", "arbitrary"),
            vmem_limit_bytes=vmem_limit_bytes,
        ),
    )(q, k_proj, v_proj, wq3, wfc3, gamma, beta)

    if return_attn:
        out, attn = results
    else:
        out, = results
        attn = None

    if len_q == 1:
        out = out.reshape(sz_b, d_model)   # matches torch.squeeze(q, 1) path
    return out, attn


def _reference(q, k, v, params, *, n_head, d_k, d_v):
    """Pure-JAX reference mirroring the PyTorch forward (eval mode, f32)."""
    sz_b, len_q, d_model = q.shape
    residual = q
    mean = jnp.mean(q, axis=-1, keepdims=True)
    var = jnp.mean((q - mean) ** 2, axis=-1, keepdims=True)
    qn = (q - mean) / jnp.sqrt(var + 1e-6)
    qn = qn * params["ln_gamma"] + params["ln_beta"]

    Q = (qn @ params["wq"]).reshape(sz_b, len_q, n_head, d_k).transpose(0, 2, 1, 3)
    K = (k @ params["wk"]).reshape(sz_b, k.shape[1], n_head, d_k).transpose(0, 2, 1, 3)
    V = (v @ params["wv"]).reshape(sz_b, v.shape[1], n_head, d_v).transpose(0, 2, 1, 3)

    scores = jnp.einsum("bhqd,bhkd->bhqk", Q / (d_k ** 0.5), K)
    attn = jax.nn.softmax(scores, axis=-1)
    o = jnp.einsum("bhqk,bhkd->bhqd", attn, V)
    o = o.transpose(0, 2, 1, 3).reshape(sz_b, len_q, n_head * d_v)
    out = o @ params["wfc"] + residual
    if len_q == 1:
        out = out.reshape(sz_b, d_model)
    return out, attn


if __name__ == "__main__":
    # Small, deterministic config.
    sz_b, seq, d_model = 2, 8, 32
    n_head, d_k, d_v = 4, 8, 8

    key = jax.random.PRNGKey(0)
    keys = jax.random.split(key, 7)

    def init_linear(kk, fan_in, fan_out):
        # deterministic uniform init (kaiming-like bound), stored as (in, out)
        bound = 1.0 / np.sqrt(fan_in)
        return jax.random.uniform(kk, (fan_in, fan_out), jnp.float32,
                                  -bound, bound)

    params = {
        "wq": init_linear(keys[0], d_model, n_head * d_k),
        "wk": init_linear(keys[1], d_model, n_head * d_k),
        "wv": init_linear(keys[2], d_model, n_head * d_v),
        "wfc": init_linear(keys[3], n_head * d_v, d_model),
        "ln_gamma": jnp.ones((d_model,), jnp.float32),
        "ln_beta": jnp.zeros((d_model,), jnp.float32),
    }

    q = jax.random.normal(keys[4], (sz_b, seq, d_model), jnp.float32)
    k = jax.random.normal(keys[5], (sz_b, seq, d_model), jnp.float32)
    v = jax.random.normal(keys[6], (sz_b, seq, d_model), jnp.float32)

    out, attn = multi_head_attention(q, k, v, params,
                                     n_head=n_head, d_k=d_k, d_v=d_v,
                                     return_attn=True)
    out = jax.block_until_ready(out)
    attn = jax.block_until_ready(attn)

    ref_out, ref_attn = _reference(q, k, v, params,
                                   n_head=n_head, d_k=d_k, d_v=d_v)
    # bf16 MXU operands + approx reciprocal -> compare against the f32
    # reference with a correspondingly looser tolerance.
    np.testing.assert_allclose(np.asarray(out), np.asarray(ref_out),
                               rtol=2e-2, atol=2e-2)
    np.testing.assert_allclose(np.asarray(attn), np.asarray(ref_attn),
                               rtol=2e-2, atol=2e-2)

    print("KERNEL_OK")
</pallas_src>

<mosaic_0001>
module attributes {stable_mosaic.version = 11 : i64} {
  func.func @_mha_kernel(%arg0: i32, %arg1: i32, %arg2: i32, %arg3: memref<1x8x32xf32, #tpu.memory_space<vmem>>, %arg4: memref<1x4x8x8xbf16, #tpu.memory_space<vmem>>, %arg5: memref<1x4x8x8xbf16, #tpu.memory_space<vmem>>, %arg6: memref<1x32x32xbf16, #tpu.memory_space<vmem>>, %arg7: memref<1x4x8x32xbf16, #tpu.memory_space<vmem>>, %arg8: memref<1x32xf32, #tpu.memory_space<vmem>>, %arg9: memref<1x32xf32, #tpu.memory_space<vmem>>, %arg10: memref<1x8x32xf32, #tpu.memory_space<vmem>>, %arg11: memref<1x4x8x8xf32, #tpu.memory_space<vmem>>, %arg12: memref<8x32xbf16, #tpu.memory_space<vmem>>, %arg13: memref<8x32xf32, #tpu.memory_space<vmem>>) attributes {dimension_semantics = [#tpu.dimension_semantics<parallel>, #tpu.dimension_semantics<parallel>, #tpu.dimension_semantics<arbitrary>], iteration_bounds = array<i64: 2, 1, 1>, scalar_prefetch = 0 : i64, scratch_operands = 2 : i64, tpu.core_type = #tpu.core_type<tc>, window_params = [{transform_indices = @transform_0, window_bounds = array<i64: 1, 8, 32>}, {transform_indices = @transform_1, window_bounds = array<i64: 1, 4, 8, 8>}, {transform_indices = @transform_2, window_bounds = array<i64: 1, 4, 8, 8>}, {pipeline_mode = #tpu.pipeline_mode<synchronous>, transform_indices = @transform_3, window_bounds = array<i64: 1, 32, 32>}, {pipeline_mode = #tpu.pipeline_mode<synchronous>, transform_indices = @transform_4, window_bounds = array<i64: 1, 4, 8, 32>}, {pipeline_mode = #tpu.pipeline_mode<synchronous>, transform_indices = @transform_5, window_bounds = array<i64: 1, 32>}, {pipeline_mode = #tpu.pipeline_mode<synchronous>, transform_indices = @transform_6, window_bounds = array<i64: 1, 32>}, {transform_indices = @transform_7, window_bounds = array<i64: 1, 8, 32>}, {transform_indices = @transform_8, window_bounds = array<i64: 1, 4, 8, 8>}]} {
    %c0_i32 = arith.constant 0 : i32
    %0 = arith.cmpi eq, %arg2, %c0_i32 : i32
    %1 = arith.extui %0 : i1 to i32
    %c0_i32_0 = arith.constant 0 : i32
    %2 = arith.cmpi ne, %1, %c0_i32_0 : i32
    scf.if %2 {
      %c0_79 = arith.constant 0 : index
      %c0_80 = arith.constant 0 : index
      %c0_81 = arith.constant 0 : index
      %123 = vector.load %arg3[%c0_79, %c0_80, %c0_81] : memref<1x8x32xf32, #tpu.memory_space<vmem>>, vector<1x8x32xf32>
      %124 = vector.shape_cast %123 : vector<1x8x32xf32> to vector<8x32xf32>
      %cst_82 = arith.constant dense<0.000000e+00> : vector<8xf32>
      %125 = vector.multi_reduction <add>, %124, %cst_82 [1] : vector<8x32xf32> to vector<8xf32>
      %126 = vector.shape_cast %125 : vector<8xf32> to vector<8x1xf32>
      %cst_83 = arith.constant 3.200000e+01 : f32
      %127 = vector.broadcast %cst_83 : f32 to vector<8x1xf32>
      %128 = arith.divf %126, %127 : vector<8x1xf32>
      %129 = vector.broadcast %128 : vector<8x1xf32> to vector<8x32xf32>
      %130 = arith.subf %124, %129 : vector<8x32xf32>
      %131 = arith.mulf %130, %130 : vector<8x32xf32>
      %cst_84 = arith.constant dense<0.000000e+00> : vector<8xf32>
      %132 = vector.multi_reduction <add>, %131, %cst_84 [1] : vector<8x32xf32> to vector<8xf32>
      %133 = vector.shape_cast %132 : vector<8xf32> to vector<8x1xf32>
      %cst_85 = arith.constant 3.200000e+01 : f32
      %134 = vector.broadcast %cst_85 : f32 to vector<8x1xf32>
      %135 = arith.divf %133, %134 : vector<8x1xf32>
      %cst_86 = arith.constant 9.99999997E-7 : f32
      %136 = vector.broadcast %cst_86 : f32 to vector<8x1xf32>
      %137 = arith.addf %135, %136 : vector<8x1xf32>
      %138 = math.rsqrt %137 : vector<8x1xf32>
      %139 = vector.broadcast %138 : vector<8x1xf32> to vector<8x32xf32>
      %140 = arith.mulf %130, %139 : vector<8x32xf32>
      %c0_87 = arith.constant 0 : index
      %c0_88 = arith.constant 0 : index
      %141 = vector.load %arg8[%c0_87, %c0_88] : memref<1x32xf32, #tpu.memory_space<vmem>>, vector<1x32xf32>
      %142 = vector.broadcast %141 : vector<1x32xf32> to vector<8x32xf32>
      %143 = arith.mulf %140, %142 : vector<8x32xf32>
      %c0_89 = arith.constant 0 : index
      %c0_90 = arith.constant 0 : index
      %144 = vector.load %arg9[%c0_89, %c0_90] : memref<1x32xf32, #tpu.memory_space<vmem>>, vector<1x32xf32>
      %145 = vector.broadcast %144 : vector<1x32xf32> to vector<8x32xf32>
      %146 = arith.addf %143, %145 : vector<8x32xf32>
      %147 = arith.truncf %146 : vector<8x32xf32> to vector<8x32xbf16>
      %c0_91 = arith.constant 0 : index
      %c0_92 = arith.constant 0 : index
      %148 = vector.load %arg12[%c0_91, %c0_92] : memref<8x32xbf16, #tpu.memory_space<vmem>>, vector<8x32xbf16>
      tpu.vector_store %arg12[%c0_91, %c0_92], %147 {strides = array<i32>} : memref<8x32xbf16, #tpu.memory_space<vmem>>, vector<8x32xbf16>,
      %c0_93 = arith.constant 0 : index
      %c0_94 = arith.constant 0 : index
      %149 = vector.load %arg13[%c0_93, %c0_94] : memref<8x32xf32, #tpu.memory_space<vmem>>, vector<8x32xf32>
      tpu.vector_store %arg13[%c0_93, %c0_94], %124 {strides = array<i32>} : memref<8x32xf32, #tpu.memory_space<vmem>>, vector<8x32xf32>,
    } else {
    }
    %c0 = arith.constant 0 : index
    %c0_1 = arith.constant 0 : index
    %3 = vector.load %arg12[%c0, %c0_1] : memref<8x32xbf16, #tpu.memory_space<vmem>>, vector<8x32xbf16>
    %4 = arith.index_cast %arg2 : i32 to index
    %c0_2 = arith.constant 0 : index
    %c0_3 = arith.constant 0 : index
    %5 = vector.load %arg6[%4, %c0_2, %c0_3] : memref<1x32x32xbf16, #tpu.memory_space<vmem>>, vector<1x32x32xbf16>
    %6 = vector.shape_cast %5 : vector<1x32x32xbf16> to vector<32x32xbf16>
    %cst = arith.constant dense<0.000000e+00> : vector<8x32xf32>
    %7 = tpu.matmul %3, %6, %cst {dimension_numbers = #tpu.dot_dimension_numbers<[1], [0], [0], [1], [0, 0, 1, 1], [], []>} : vector<8x32xbf16>, vector<32x32xbf16>, vector<8x32xf32> -> vector<8x32xf32>
    %8 = arith.truncf %7 : vector<8x32xf32> to vector<8x32xbf16>
    %9 = arith.index_cast %arg2 : i32 to index
    %c0_4 = arith.constant 0 : index
    %c0_5 = arith.constant 0 : index
    %c0_6 = arith.constant 0 : index
    %10 = vector.load %arg7[%9, %c0_4, %c0_5, %c0_6] : memref<1x4x8x32xbf16, #tpu.memory_space<vmem>>, vector<1x4x8x32xbf16>
    %11 = vector.shape_cast %10 : vector<1x4x8x32xbf16> to vector<4x8x32xbf16>
    %cst_7 = arith.constant 0.000000e+00 : f32
    %12 = vector.broadcast %cst_7 : f32 to vector<8x32xf32>
    %13 = vector.extract_strided_slice %8 {offsets = [0, 0], sizes = [8, 8], strides = [1, 1]} : vector<8x32xbf16> to vector<8x8xbf16>
    %c0_8 = arith.constant 0 : index
    %c0_9 = arith.constant 0 : index
    %c0_10 = arith.constant 0 : index
    %c0_11 = arith.constant 0 : index
    %14 = vector.load %arg4[%c0_8, %c0_9, %c0_10, %c0_11] : memref<1x4x8x8xbf16, #tpu.memory_space<vmem>>, vector<1x1x8x8xbf16>
    %15 = vector.shape_cast %14 : vector<1x1x8x8xbf16> to vector<8x8xbf16>
    %c0_12 = arith.constant 0 : index
    %c0_13 = arith.constant 0 : index
    %c0_14 = arith.constant 0 : index
    %c0_15 = arith.constant 0 : index
    %16 = vector.load %arg5[%c0_12, %c0_13, %c0_14, %c0_15] : memref<1x4x8x8xbf16, #tpu.memory_space<vmem>>, vector<1x1x8x8xbf16>
    %17 = vector.shape_cast %16 : vector<1x1x8x8xbf16> to vector<8x8xbf16>
    %cst_16 = arith.constant dense<0.000000e+00> : vector<8x8xf32>
    %18 = tpu.matmul %13, %15, %cst_16 {dimension_numbers = #tpu.dot_dimension_numbers<[1], [1], [0], [0], [0, 0, 1, 0], [], []>} : vector<8x8xbf16>, vector<8x8xbf16>, vector<8x8xf32> -> vector<8x8xf32>
    %cst_17 = arith.constant dense<0xFF800000> : vector<8xf32>
    %19 = vector.multi_reduction <maximumf>, %18, %cst_17 [1] : vector<8x8xf32> to vector<8xf32>
    %20 = vector.shape_cast %19 : vector<8xf32> to vector<8x1xf32>
    %21 = vector.broadcast %20 : vector<8x1xf32> to vector<8x8xf32>
    %22 = arith.subf %18, %21 : vector<8x8xf32>
    %23 = math.exp %22 : vector<8x8xf32>
    %cst_18 = arith.constant dense<0.000000e+00> : vector<8xf32>
    %24 = vector.multi_reduction <add>, %23, %cst_18 [1] : vector<8x8xf32> to vector<8xf32>
    %25 = vector.shape_cast %24 : vector<8xf32> to vector<8x1xf32>
    %26 = tpu.reciprocal %25 {approx = true} : vector<8x1xf32> -> vector<8x1xf32>
    %27 = vector.broadcast %26 : vector<8x1xf32> to vector<8x8xf32>
    %28 = arith.mulf %23, %27 : vector<8x8xf32>
    %c0_19 = arith.constant 0 : index
    %c0_20 = arith.constant 0 : index
    %c0_21 = arith.constant 0 : index
    %c0_22 = arith.constant 0 : index
    %29 = vector.load %arg11[%c0_19, %c0_20, %c0_21, %c0_22] : memref<1x4x8x8xf32, #tpu.memory_space<vmem>>, vector<1x1x8x8xf32>
    %30 = vector.shape_cast %29 : vector<1x1x8x8xf32> to vector<8x8xf32>
    %31 = vector.shape_cast %28 : vector<8x8xf32> to vector<1x1x8x8xf32>
    tpu.vector_store %arg11[%c0_19, %c0_20, %c0_21, %c0_22], %31 {strides = array<i32>} : memref<1x4x8x8xf32, #tpu.memory_space<vmem>>, vector<1x1x8x8xf32>,
    %32 = arith.truncf %28 : vector<8x8xf32> to vector<8x8xbf16>
    %cst_23 = arith.constant dense<0.000000e+00> : vector<8x8xf32>
    %33 = tpu.matmul %32, %17, %cst_23 {dimension_numbers = #tpu.dot_dimension_numbers<[1], [0], [0], [1], [0, 0, 1, 1], [], []>} : vector<8x8xbf16>, vector<8x8xbf16>, vector<8x8xf32> -> vector<8x8xf32>
    %34 = arith.truncf %33 : vector<8x8xf32> to vector<8x8xbf16>
    %35 = vector.extract_strided_slice %11 {offsets = [0, 0, 0], sizes = [1, 8, 32], strides = [1, 1, 1]} : vector<4x8x32xbf16> to vector<1x8x32xbf16>
    %36 = vector.shape_cast %35 : vector<1x8x32xbf16> to vector<8x32xbf16>
    %cst_24 = arith.constant dense<0.000000e+00> : vector<8x32xf32>
    %37 = tpu.matmul %34, %36, %cst_24 {dimension_numbers = #tpu.dot_dimension_numbers<[1], [0], [0], [1], [0, 0, 1, 1], [], []>} : vector<8x8xbf16>, vector<8x32xbf16>, vector<8x32xf32> -> vector<8x32xf32>
    %38 = arith.addf %12, %37 : vector<8x32xf32>
    %39 = vector.extract_strided_slice %8 {offsets = [0, 8], sizes = [8, 8], strides = [1, 1]} : vector<8x32xbf16> to vector<8x8xbf16>
    %c0_25 = arith.constant 0 : index
    %c1 = arith.constant 1 : index
    %c0_26 = arith.constant 0 : index
    %c0_27 = arith.constant 0 : index
    %40 = vector.load %arg4[%c0_25, %c1, %c0_26, %c0_27] : memref<1x4x8x8xbf16, #tpu.memory_space<vmem>>, vector<1x1x8x8xbf16>
    %41 = vector.shape_cast %40 : vector<1x1x8x8xbf16> to vector<8x8xbf16>
    %c0_28 = arith.constant 0 : index
    %c1_29 = arith.constant 1 : index
    %c0_30 = arith.constant 0 : index
    %c0_31 = arith.constant 0 : index
    %42 = vector.load %arg5[%c0_28, %c1_29, %c0_30, %c0_31] : memref<1x4x8x8xbf16, #tpu.memory_space<vmem>>, vector<1x1x8x8xbf16>
    %43 = vector.shape_cast %42 : vector<1x1x8x8xbf16> to vector<8x8xbf16>
    %cst_32 = arith.constant dense<0.000000e+00> : vector<8x8xf32>
    %44 = tpu.matmul %39, %41, %cst_32 {dimension_numbers = #tpu.dot_dimension_numbers<[1], [1], [0], [0], [0, 0, 1, 0], [], []>} : vector<8x8xbf16>, vector<8x8xbf16>, vector<8x8xf32> -> vector<8x8xf32>
    %cst_33 = arith.constant dense<0xFF800000> : vector<8xf32>
    %45 = vector.multi_reduction <maximumf>, %44, %cst_33 [1] : vector<8x8xf32> to vector<8xf32>
    %46 = vector.shape_cast %45 : vector<8xf32> to vector<8x1xf32>
    %47 = vector.broadcast %46 : vector<8x1xf32> to vector<8x8xf32>
    %48 = arith.subf %44, %47 : vector<8x8xf32>
    %49 = math.exp %48 : vector<8x8xf32>
    %cst_34 = arith.constant dense<0.000000e+00> : vector<8xf32>
    %50 = vector.multi_reduction <add>, %49, %cst_34 [1] : vector<8x8xf32> to vector<8xf32>
    %51 = vector.shape_cast %50 : vector<8xf32> to vector<8x1xf32>
    %52 = tpu.reciprocal %51 {approx = true} : vector<8x1xf32> -> vector<8x1xf32>
    %53 = vector.broadcast %52 : vector<8x1xf32> to vector<8x8xf32>
    %54 = arith.mulf %49, %53 : vector<8x8xf32>
    %c0_35 = arith.constant 0 : index
    %c1_36 = arith.constant 1 : index
    %c0_37 = arith.constant 0 : index
    %c0_38 = arith.constant 0 : index
    %55 = vector.load %arg11[%c0_35, %c1_36, %c0_37, %c0_38] : memref<1x4x8x8xf32, #tpu.memory_space<vmem>>, vector<1x1x8x8xf32>
    %56 = vector.shape_cast %55 : vector<1x1x8x8xf32> to vector<8x8xf32>
    %57 = vector.shape_cast %54 : vector<8x8xf32> to vector<1x1x8x8xf32>
    tpu.vector_store %arg11[%c0_35, %c1_36, %c0_37, %c0_38], %57 {strides = array<i32>} : memref<1x4x8x8xf32, #tpu.memory_space<vmem>>, vector<1x1x8x8xf32>,
    %58 = arith.truncf %54 : vector<8x8xf32> to vector<8x8xbf16>
    %cst_39 = arith.constant dense<0.000000e+00> : vector<8x8xf32>
    %59 = tpu.matmul %58, %43, %cst_39 {dimension_numbers = #tpu.dot_dimension_numbers<[1], [0], [0], [1], [0, 0, 1, 1], [], []>} : vector<8x8xbf16>, vector<8x8xbf16>, vector<8x8xf32> -> vector<8x8xf32>
    %60 = arith.truncf %59 : vector<8x8xf32> to vector<8x8xbf16>
    %61 = vector.extract_strided_slice %11 {offsets = [1, 0, 0], sizes = [1, 8, 32], strides = [1, 1, 1]} : vector<4x8x32xbf16> to vector<1x8x32xbf16>
    %62 = vector.shape_cast %61 : vector<1x8x32xbf16> to vector<8x32xbf16>
    %cst_40 = arith.constant dense<0.000000e+00> : vector<8x32xf32>
    %63 = tpu.matmul %60, %62, %cst_40 {dimension_numbers = #tpu.dot_dimension_numbers<[1], [0], [0], [1], [0, 0, 1, 1], [], []>} : vector<8x8xbf16>, vector<8x32xbf16>, vector<8x32xf32> -> vector<8x32xf32>
    %64 = arith.addf %38, %63 : vector<8x32xf32>
    %65 = vector.extract_strided_slice %8 {offsets = [0, 16], sizes = [8, 8], strides = [1, 1]} : vector<8x32xbf16> to vector<8x8xbf16>
    %c0_41 = arith.constant 0 : index
    %c2 = arith.constant 2 : index
    %c0_42 = arith.constant 0 : index
    %c0_43 = arith.constant 0 : index
    %66 = vector.load %arg4[%c0_41, %c2, %c0_42, %c0_43] : memref<1x4x8x8xbf16, #tpu.memory_space<vmem>>, vector<1x1x8x8xbf16>
    %67 = vector.shape_cast %66 : vector<1x1x8x8xbf16> to vector<8x8xbf16>
    %c0_44 = arith.constant 0 : index
    %c2_45 = arith.constant 2 : index
    %c0_46 = arith.constant 0 : index
    %c0_47 = arith.constant 0 : index
    %68 = vector.load %arg5[%c0_44, %c2_45, %c0_46, %c0_47] : memref<1x4x8x8xbf16, #tpu.memory_space<vmem>>, vector<1x1x8x8xbf16>
    %69 = vector.shape_cast %68 : vector<1x1x8x8xbf16> to vector<8x8xbf16>
    %cst_48 = arith.constant dense<0.000000e+00> : vector<8x8xf32>
    %70 = tpu.matmul %65, %67, %cst_48 {dimension_numbers = #tpu.dot_dimension_numbers<[1], [1], [0], [0], [0, 0, 1, 0], [], []>} : vector<8x8xbf16>, vector<8x8xbf16>, vector<8x8xf32> -> vector<8x8xf32>
    %cst_49 = arith.constant dense<0xFF800000> : vector<8xf32>
    %71 = vector.multi_reduction <maximumf>, %70, %cst_49 [1] : vector<8x8xf32> to vector<8xf32>
    %72 = vector.shape_cast %71 : vector<8xf32> to vector<8x1xf32>
    %73 = vector.broadcast %72 : vector<8x1xf32> to vector<8x8xf32>
    %74 = arith.subf %70, %73 : vector<8x8xf32>
    %75 = math.exp %74 : vector<8x8xf32>
    %cst_50 = arith.constant dense<0.000000e+00> : vector<8xf32>
    %76 = vector.multi_reduction <add>, %75, %cst_50 [1] : vector<8x8xf32> to vector<8xf32>
    %77 = vector.shape_cast %76 : vector<8xf32> to vector<8x1xf32>
    %78 = tpu.reciprocal %77 {approx = true} : vector<8x1xf32> -> vector<8x1xf32>
    %79 = vector.broadcast %78 : vector<8x1xf32> to vector<8x8xf32>
    %80 = arith.mulf %75, %79 : vector<8x8xf32>
    %c0_51 = arith.constant 0 : index
    %c2_52 = arith.constant 2 : index
    %c0_53 = arith.constant 0 : index
    %c0_54 = arith.constant 0 : index
    %81 = vector.load %arg11[%c0_51, %c2_52, %c0_53, %c0_54] : memref<1x4x8x8xf32, #tpu.memory_space<vmem>>, vector<1x1x8x8xf32>
    %82 = vector.shape_cast %81 : vector<1x1x8x8xf32> to vector<8x8xf32>
    %83 = vector.shape_cast %80 : vector<8x8xf32> to vector<1x1x8x8xf32>
    tpu.vector_store %arg11[%c0_51, %c2_52, %c0_53, %c0_54], %83 {strides = array<i32>} : memref<1x4x8x8xf32, #tpu.memory_space<vmem>>, vector<1x1x8x8xf32>,
    %84 = arith.truncf %80 : vector<8x8xf32> to vector<8x8xbf16>
    %cst_55 = arith.constant dense<0.000000e+00> : vector<8x8xf32>
    %85 = tpu.matmul %84, %69, %cst_55 {dimension_numbers = #tpu.dot_dimension_numbers<[1], [0], [0], [1], [0, 0, 1, 1], [], []>} : vector<8x8xbf16>, vector<8x8xbf16>, vector<8x8xf32> -> vector<8x8xf32>
    %86 = arith.truncf %85 : vector<8x8xf32> to vector<8x8xbf16>
    %87 = vector.extract_strided_slice %11 {offsets = [2, 0, 0], sizes = [1, 8, 32], strides = [1, 1, 1]} : vector<4x8x32xbf16> to vector<1x8x32xbf16>
    %88 = vector.shape_cast %87 : vector<1x8x32xbf16> to vector<8x32xbf16>
    %cst_56 = arith.constant dense<0.000000e+00> : vector<8x32xf32>
    %89 = tpu.matmul %86, %88, %cst_56 {dimension_numbers = #tpu.dot_dimension_numbers<[1], [0], [0], [1], [0, 0, 1, 1], [], []>} : vector<8x8xbf16>, vector<8x32xbf16>, vector<8x32xf32> -> vector<8x32xf32>
    %90 = arith.addf %64, %89 : vector<8x32xf32>
    %91 = vector.extract_strided_slice %8 {offsets = [0, 24], sizes = [8, 8], strides = [1, 1]} : vector<8x32xbf16> to vector<8x8xbf16>
    %c0_57 = arith.constant 0 : index
    %c3 = arith.constant 3 : index
    %c0_58 = arith.constant 0 : index
    %c0_59 = arith.constant 0 : index
    %92 = vector.load %arg4[%c0_57, %c3, %c0_58, %c0_59] : memref<1x4x8x8xbf16, #tpu.memory_space<vmem>>, vector<1x1x8x8xbf16>
    %93 = vector.shape_cast %92 : vector<1x1x8x8xbf16> to vector<8x8xbf16>
    %c0_60 = arith.constant 0 : index
    %c3_61 = arith.constant 3 : index
    %c0_62 = arith.constant 0 : index
    %c0_63 = arith.constant 0 : index
    %94 = vector.load %arg5[%c0_60, %c3_61, %c0_62, %c0_63] : memref<1x4x8x8xbf16, #tpu.memory_space<vmem>>, vector<1x1x8x8xbf16>
    %95 = vector.shape_cast %94 : vector<1x1x8x8xbf16> to vector<8x8xbf16>
    %cst_64 = arith.constant dense<0.000000e+00> : vector<8x8xf32>
    %96 = tpu.matmul %91, %93, %cst_64 {dimension_numbers = #tpu.dot_dimension_numbers<[1], [1], [0], [0], [0, 0, 1, 0], [], []>} : vector<8x8xbf16>, vector<8x8xbf16>, vector<8x8xf32> -> vector<8x8xf32>
    %cst_65 = arith.constant dense<0xFF800000> : vector<8xf32>
    %97 = vector.multi_reduction <maximumf>, %96, %cst_65 [1] : vector<8x8xf32> to vector<8xf32>
    %98 = vector.shape_cast %97 : vector<8xf32> to vector<8x1xf32>
    %99 = vector.broadcast %98 : vector<8x1xf32> to vector<8x8xf32>
    %100 = arith.subf %96, %99 : vector<8x8xf32>
    %101 = math.exp %100 : vector<8x8xf32>
    %cst_66 = arith.constant dense<0.000000e+00> : vector<8xf32>
    %102 = vector.multi_reduction <add>, %101, %cst_66 [1] : vector<8x8xf32> to vector<8xf32>
    %103 = vector.shape_cast %102 : vector<8xf32> to vector<8x1xf32>
    %104 = tpu.reciprocal %103 {approx = true} : vector<8x1xf32> -> vector<8x1xf32>
    %105 = vector.broadcast %104 : vector<8x1xf32> to vector<8x8xf32>
    %106 = arith.mulf %101, %105 : vector<8x8xf32>
    %c0_67 = arith.constant 0 : index
    %c3_68 = arith.constant 3 : index
    %c0_69 = arith.constant 0 : index
    %c0_70 = arith.constant 0 : index
    %107 = vector.load %arg11[%c0_67, %c3_68, %c0_69, %c0_70] : memref<1x4x8x8xf32, #tpu.memory_space<vmem>>, vector<1x1x8x8xf32>
    %108 = vector.shape_cast %107 : vector<1x1x8x8xf32> to vector<8x8xf32>
    %109 = vector.shape_cast %106 : vector<8x8xf32> to vector<1x1x8x8xf32>
    tpu.vector_store %arg11[%c0_67, %c3_68, %c0_69, %c0_70], %109 {strides = array<i32>} : memref<1x4x8x8xf32, #tpu.memory_space<vmem>>, vector<1x1x8x8xf32>,
    %110 = arith.truncf %106 : vector<8x8xf32> to vector<8x8xbf16>
    %cst_71 = arith.constant dense<0.000000e+00> : vector<8x8xf32>
    %111 = tpu.matmul %110, %95, %cst_71 {dimension_numbers = #tpu.dot_dimension_numbers<[1], [0], [0], [1], [0, 0, 1, 1], [], []>} : vector<8x8xbf16>, vector<8x8xbf16>, vector<8x8xf32> -> vector<8x8xf32>
    %112 = arith.truncf %111 : vector<8x8xf32> to vector<8x8xbf16>
    %113 = vector.extract_strided_slice %11 {offsets = [3, 0, 0], sizes = [1, 8, 32], strides = [1, 1, 1]} : vector<4x8x32xbf16> to vector<1x8x32xbf16>
    %114 = vector.shape_cast %113 : vector<1x8x32xbf16> to vector<8x32xbf16>
    %cst_72 = arith.constant dense<0.000000e+00> : vector<8x32xf32>
    %115 = tpu.matmul %112, %114, %cst_72 {dimension_numbers = #tpu.dot_dimension_numbers<[1], [0], [0], [1], [0, 0, 1, 1], [], []>} : vector<8x8xbf16>, vector<8x32xbf16>, vector<8x32xf32> -> vector<8x32xf32>
    %116 = arith.addf %90, %115 : vector<8x32xf32>
    %c0_73 = arith.constant 0 : index
    %c0_74 = arith.constant 0 : index
    %117 = vector.load %arg13[%c0_73, %c0_74] : memref<8x32xf32, #tpu.memory_space<vmem>>, vector<8x32xf32>
    %118 = arith.addf %117, %116 : vector<8x32xf32>
    %c0_75 = arith.constant 0 : index
    %c0_76 = arith.constant 0 : index
    %119 = vector.load %arg13[%c0_75, %c0_76] : memref<8x32xf32, #tpu.memory_space<vmem>>, vector<8x32xf32>
    tpu.vector_store %arg13[%c0_75, %c0_76], %118 {strides = array<i32>} : memref<8x32xf32, #tpu.memory_space<vmem>>, vector<8x32xf32>,
    %c0_i32_77 = arith.constant 0 : i32
    %120 = arith.cmpi eq, %arg2, %c0_i32_77 : i32
    %121 = arith.extui %120 : i1 to i32
    %c0_i32_78 = arith.constant 0 : i32
    %122 = arith.cmpi ne, %121, %c0_i32_78 : i32
    scf.if %122 {
      %c0_79 = arith.constant 0 : index
      %c0_80 = arith.constant 0 : index
      %123 = vector.load %arg13[%c0_79, %c0_80] : memref<8x32xf32, #tpu.memory_space<vmem>>, vector<8x32xf32>
      %c0_81 = arith.constant 0 : index
      %c0_82 = arith.constant 0 : index
      %c0_83 = arith.constant 0 : index
      %124 = vector.load %arg10[%c0_81, %c0_82, %c0_83] : memref<1x8x32xf32, #tpu.memory_space<vmem>>, vector<1x8x32xf32>
      %125 = vector.shape_cast %124 : vector<1x8x32xf32> to vector<8x32xf32>
      %126 = vector.shape_cast %123 : vector<8x32xf32> to vector<1x8x32xf32>
      tpu.vector_store %arg10[%c0_81, %c0_82, %c0_83], %126 {strides = array<i32>} : memref<1x8x32xf32, #tpu.memory_space<vmem>>, vector<1x8x32xf32>,
    } else {
    }
    return
  }
  func.func @transform_0(%arg0: i32, %arg1: i32, %arg2: i32) -> (i32, i32, i32) {
    %c0_i32 = arith.constant 0 : i32
    %c0_i32_0 = arith.constant 0 : i32
    return %arg0, %arg1, %c0_i32 : i32, i32, i32
  }
  func.func @transform_1(%arg0: i32, %arg1: i32, %arg2: i32) -> (i32, i32, i32, i32) {
    %c0_i32 = arith.constant 0 : i32
    %c0_i32_0 = arith.constant 0 : i32
    %c0_i32_1 = arith.constant 0 : i32
    return %arg0, %arg2, %c0_i32, %c0_i32_0 : i32, i32, i32, i32
  }
  func.func @transform_2(%arg0: i32, %arg1: i32, %arg2: i32) -> (i32, i32, i32, i32) {
    %c0_i32 = arith.constant 0 : i32
    %c0_i32_0 = arith.constant 0 : i32
    %c0_i32_1 = arith.constant 0 : i32
    return %arg0, %arg2, %c0_i32, %c0_i32_0 : i32, i32, i32, i32
  }
  func.func @transform_3(%arg0: i32, %arg1: i32, %arg2: i32) -> (i32, i32, i32) {
    %c0_i32 = arith.constant 0 : i32
    %c0_i32_0 = arith.constant 0 : i32
    %c0_i32_1 = arith.constant 0 : i32
    %c0_i32_2 = arith.constant 0 : i32
    return %c0_i32, %c0_i32_0, %c0_i32_1 : i32, i32, i32
  }
  func.func @transform_4(%arg0: i32, %arg1: i32, %arg2: i32) -> (i32, i32, i32, i32) {
    %c0_i32 = arith.constant 0 : i32
    %c0_i32_0 = arith.constant 0 : i32
    %c0_i32_1 = arith.constant 0 : i32
    %c0_i32_2 = arith.constant 0 : i32
    %c0_i32_3 = arith.constant 0 : i32
    return %c0_i32, %c0_i32_0, %c0_i32_1, %c0_i32_2 : i32, i32, i32, i32
  }
  func.func @transform_5(%arg0: i32, %arg1: i32, %arg2: i32) -> (i32, i32) {
    %c0_i32 = arith.constant 0 : i32
    %c0_i32_0 = arith.constant 0 : i32
    %c0_i32_1 = arith.constant 0 : i32
    return %c0_i32, %c0_i32_0 : i32, i32
  }
  func.func @transform_6(%arg0: i32, %arg1: i32, %arg2: i32) -> (i32, i32) {
    %c0_i32 = arith.constant 0 : i32
    %c0_i32_0 = arith.constant 0 : i32
    %c0_i32_1 = arith.constant 0 : i32
    return %c0_i32, %c0_i32_0 : i32, i32
  }
  func.func @transform_7(%arg0: i32, %arg1: i32, %arg2: i32) -> (i32, i32, i32) {
    %c0_i32 = arith.constant 0 : i32
    %c0_i32_0 = arith.constant 0 : i32
    return %arg0, %arg1, %c0_i32 : i32, i32, i32
  }
  func.func @transform_8(%arg0: i32, %arg1: i32, %arg2: i32) -> (i32, i32, i32, i32) {
    %c0_i32 = arith.constant 0 : i32
    %c0_i32_0 = arith.constant 0 : i32
    return %arg0, %arg2, %arg1, %c0_i32 : i32, i32, i32, i32
  }
}

</mosaic_0001>

<bundles_post_ra>
// kernel: tpu_custom_call.1
= control target key start
LH: loop header
LB: loop body
LE: loop exit
PB: predicated region body
PF: predicated region fallthrough
CT: control target
= control target key end

     0   :  { %s2579_s0 = inlined_call_operand.hbm [shape: f32[2,8,32], index: 0, kind: input, shape index: {}]   ;;  %s2580_s1 = inlined_call_operand.hbm [shape: bf16[2,4,8,8], index: 1, kind: input, shape index: {}]   ;;  %s2581_s2 = inlined_call_operand.hbm [shape: bf16[2,4,8,8], index: 2, kind: input, shape index: {}]   ;;  %s2582_s3 = inlined_call_operand.hbm [shape: bf16[1,32,32], index: 3, kind: input, shape index: {}]   ;;  %s2583_s4 = inlined_call_operand.hbm [shape: bf16[1,4,8,32], index: 4, kind: input, shape index: {}]   ;;  %s2584_s5 = inlined_call_operand.vmem [shape: f32[1,32], index: 5, kind: input, shape index: {}]   ;;  %s2585_s6 = inlined_call_operand.vmem [shape: f32[1,32], index: 6, kind: input, shape index: {}]   ;;  %s2586_s7 = inlined_call_operand.hbm [shape: f32[2,8,32], index: 7, kind: output, shape index: {0}]   ;;  %s2587_s8 = inlined_call_operand.hbm [shape: f32[2,4,8,8], index: 8, kind: output, shape index: {1}]  }
   0x1   :  { %2614 = sst [smem:[#allocation29_spill]] %s2580_s1 }
   0x2   :  { %2615 = sst [smem:[#allocation30_spill]] %s2582_s3 }
   0x3   :  { %2616 = sst [smem:[#allocation31_spill]] %s2584_s5 }
   0x4   :  { %2617 = sst [smem:[#allocation32_spill]] %s2585_s6 }
   0x5   :  { %2618 = sst [smem:[#allocation33_spill]] %s2586_s7 }
   0x6   :  { %2619 = sst [smem:[#allocation34_spill]] %s2587_s8 }
   0x7   :  { %14 = vsyncpa [#allocation5], 0 }
   0x8   :  { %16 = vsyncpa [#allocation5 + $0x1], 0 }
   0x9   :  { %17 = vsyncpa [#allocation8], 0 }
   0xa   :  { %19 = vsyncpa [#allocation8 + $0x1], 0 }
   0xb   :  { %20 = vsyncpa [#allocation11], 0 }
   0xc   :  { %21 = vsyncpa [#allocation6], 0 }
   0xd   :  { %23 = vsyncpa [#allocation6 + $0x1], 0 }
   0xe   :  { %24 = vsyncpa [#allocation15], 0 }
   0xf   :  { %26 = vsyncpa [#allocation15 + $0x1], 0  ;;  %s2086_s27 = smov 0   ;;  %s2088_s28 = smov 0  }
  0x10   :  { %s2090_s29 = smov 0   ;;  %s2092_s30 = smov 0  }
  0x11   :  { %s2094_s9 = smov 0   ;;  %s2096_s10 = smov 0  }
  0x12 LB: > { %2620 = sst [smem:[#allocation21_spill]] %s2003_s27  ;;  %s2117_s11 = sadd.s32 4294967295, %s2023_s10   ;;  %s2023_s10 = sphi %s2096_s10, %s32_s10   ;;  %s2019_s9 = sphi %s2094_s9, %s2671_s9   ;;  %s2015_s30 = sphi %s2092_s30, %s2670_s30   ;;  %s2011_s29 = sphi %s2090_s29, %s2666_s29   ;;  %s2007_s28 = sphi %s2088_s28, %s2669_s28   ;;  %s2003_s27 = sphi %s2086_s27, %s2668_s27  }
  0x13   : > { %2621 = sst [smem:[#allocation22_spill]] %s2011_s29  ;;  %s1464_s12 = sadd.s32 4294967294, %s2023_s10  }
  0x14   : > { %2622 = sst [smem:[#allocation23_spill]] %s2015_s30  ;;  %p67_p0 = scmp.ne.s32.totalorder %s2011_s29, %s2007_s28 }
  0x15   : > { %2623 = sst [smem:[#allocation24_spill]] %s2023_s10  ;;  %p68_p1 = scmp.eq.s32.totalorder %s2023_s10, 0 }
  0x16   : > { %p73_p2 = scmp.ne.s32.totalorder %s2007_s28, %s2003_s27  ;;  %p2590_p3 = scmp.eq.s32.totalorder %s2117_s11, 0 }
  0x17   : > { %p239_p4 = scmp.eq.s32.totalorder %s2117_s11, 1  ;;  %p2128_p5 = por %p68_p1, %p67_p0 }
  0x18   : > { %p245_p6 = scmp.eq.s32.totalorder %s1464_s12, 1  ;;  %p2134_p7 = por %p2590_p3, %p73_p2 }
  0x19   : > { %p2138_p8 = por %p239_p4, %p67_p0  ;;  %p1465_p10 = scmp.ge.s32.totalorder %s2023_s10, 1 }
  0x1a   : > { %s2625_s15 = scalar_select %p2134_p7, 1, 0 }
  0x1b   : > { %s2626_s16 = scalar_select %p2138_p8, 1, 0 }
  0x1c   : > { %p2142_p9 = por %p245_p6, %p73_p2  ;;  %p282_p11 = scmp.lt.s32.totalorder %s2023_s10, 3 }
  0x1d   : > { %2627 = sst [smem:[#allocation25_spill]] %s2626_s16  ;;  %s2025_s19 = smov [#allocation10]  }
  0x1e   : > { %s2628_s17 = scalar_select %p2142_p9, 1, 0 }
  0x1f   : > { %p2148_p12 = pnand %p1465_p10, %p282_p11  ;;  %s294_s20 = sshll.u32 %s2025_s19, 4  ;;  %s2152_s20 = int_to_ptr.vmem [resolvable:$true] %s294_s20 }
  0x20   : > { %2629 = sst [smem:[#allocation26_spill]] %s2628_s17  ;;  %s51_s22 = sadd.s32 1, %s2019_s9 }
  0x21   : > { %s2630_s18 = scalar_select %p2148_p12, 1, 0 }
  0x22   : > { %p1646_p13 = pneg %p2148_p12  ;;  %s2166_s23 = sand.u32 1, %s2011_s29  }
  0x23   : > { %p2168_p4 = scmp.ge.s32.totalorder %s51_s22, 2  ;;  %s2633_s3 = sld [smem:[#allocation30_spill]] }
  0x24   : > { %p2160_p2 = pnand %p1646_p13, %p2590_p3 }
  0x26   : > { %s2631_s21 = scalar_select %p2160_p2, 1, 0 }
  0x27   : > { %p2603_p10 = pneg %p2160_p2 }
  0x29   : > { %s1755_s12 = scalar_lea.hbm %s2633_s3, 256 }
  0x2a   : > { %p1756_p6 = scmp.ne.s32.totalorder %s2633_s3, %s1755_s12  ;;  %p1762_p0 = scmp.lt.u32.totalorder %s1755_s12, %s2633_s3 }
  0x2c   : > { %p1758_p11 = pnand %p2603_p10, %p1756_p6 }
  0x2e   : > { %p1759_p13 = pneg %p1758_p11 }
  0x30   : > { %p1764_p3 = pnand %p1762_p0, %p1759_p13 }
  0x32   : > { %1767 = shalt.err (!%p1764_p3)
}
  0x33   : > { %s1768_s25 = scalar_lea.vmem %s2152_s20, 256  ;;  %p1776_p7 = scmp.lt.s32.totalorder %s2152_s20, %s2152_s20 }
  0x34   : > { %p1769_p1 = scmp.ne.s32.totalorder %s2152_s20, %s1768_s25  ;;  %p1777_p6 = scmp.lt.s32.totalorder %s1768_s25, %s1768_s25 }
  0x36   : > { %p1771_p9 = pnand %p1769_p1, %p2603_p10  ;;  %p1778_p11 = por %p1777_p6, %p1776_p7 }
  0x38   : > { %p1772_p8 = pneg %p1771_p9 }
  0x3a   : > { %p1779_p12 = pnand %p1778_p11, %p1772_p8 }
  0x3c   : > { %1782 = shalt.err (!%p1779_p12)
}
  0x3d   : > { %s2599_s27 = smov 64   ;;  %s2027_s13 = smov 4  }
  0x3e   : > { %1649 = dma.hbm_to_vmem [thread:$0]  (!%p2160_p2), %s2633_s3, 256, %s2152_s20, [#allocation11], %s2599_s27, %s2599_s27, %s2027_s13  }
  0x3f   : > { %s2673_s22 = smov (%p2168_p4, %s51_s22), 0  ;;  %p2635_p3 = scmp.lt.s32.totalorder %s2023_s10, 2 }
  0x40   : > { %2634 = sst [smem:[#allocation27_spill]] %s2673_s22  ;;  %s346_s19 = sand.u32 1, %s2023_s10  }
  0x41   : > { %p2210_p7 = pnand %p2635_p3, %p2128_p5  ;;  %s55_s25 = ssub.s32 %s2019_s9, %s2673_s22 }
  0x42   : > { %p58_p8 = scmp.eq.s32.totalorder %s55_s25, 0  ;;  %s2601_s7 = sshll.u32 %s2166_s23, 4 }
  0x43   : > { %s2636_s12 = scalar_select %p2210_p7, 1, 0 }
  0x44   : > { %s2602_s8 = sshll.u32 %s2019_s9, 8  ;;  %s2637_s16 = sadd.s32 1, %s2011_s29 }
  0x45   : > { %s2222_s30 = scalar_select %p58_p8, %s2011_s29, %s2637_s16  }
  0x46   : > { %s2639_s1 = sld [smem:[#allocation29_spill]]  ;;  %s350_s17 = scalar_lea.vmem [#allocation7], %s2601_s7 }
  0x47   : > { %2638 = sst [smem:[#allocation28_spill]] %s2222_s30  ;;  %s359_s26 = sshll.u32 %s350_s17, 4  ;;  %s2233_s26 = int_to_ptr.vmem [resolvable:$true] %s359_s26 }
  0x48   : > { %s2235_s25 = scalar_lea.sflag [#allocation8], %s346_s19  ;;  %p2241_p9 = pneg %p2210_p7 }
  0x4a   : > { %s2640_s16 = scalar_select %p2241_p9, 1, 0 }
  0x4c   : > { %s2229_s14 = scalar_lea.hbm %s2639_s1, %s2602_s8  ;;  %s1788_s7 = scalar_lea.hbm %s2639_s1, 512 }
  0x4d   : > { %s1783_s27 = scalar_lea.hbm %s2229_s14, 256  ;;  %p1789_p1 = scmp.lt.u32.totalorder %s2229_s14, %s2639_s1 }
  0x4e   : > { %p1784_p5 = scmp.ne.s32.totalorder %s2229_s14, %s1783_s27  ;;  %p1790_p4 = scmp.lt.u32.totalorder %s1788_s7, %s1783_s27 }
  0x4f   : > { %p1792_p6 = scmp.lt.u32.totalorder %s1783_s27, %s2229_s14 }
  0x50   : > { %p1786_p12 = pnand %p2241_p9, %p1784_p5  ;;  %p1791_p13 = por %p1790_p4, %p1789_p1 }
  0x52   : > { %p1787_p0 = pneg %p1786_p12  ;;  %p1793_p11 = por %p1792_p6, %p1791_p13 }
  0x54   : > { %p1794_p3 = pnand %p1793_p11, %p1787_p0 }
  0x56   : > { %1797 = shalt.err (!%p1794_p3)
}
  0x57   : > { %s1798_s19 = scalar_lea.vmem %s2233_s26, 256  ;;  %s2028_s20 = smov [#allocation7]  }
  0x58   : > { %p1799_p8 = scmp.ne.s32.totalorder %s2233_s26, %s1798_s19  ;;  %s1803_s24 = sshll.u32 %s2028_s20, 4  ;;  %s1804_s24 = int_to_ptr.vmem [resolvable:$false] %s1803_s24 }
  0x59   : > { %s1805_s8 = scalar_lea.vmem %s1804_s24, 512  ;;  %p1806_p10 = scmp.lt.s32.totalorder %s2233_s26, %s1804_s24 }
  0x5a   : > { %p1801_p5 = pnand %p1799_p8, %p2241_p9  ;;  %p1807_p2 = scmp.lt.s32.totalorder %s1805_s8, %s1798_s19 }
  0x5c   : > { %p1802_p12 = pneg %p1801_p5  ;;  %p1808_p1 = por %p1807_p2, %p1806_p10 }
  0x5e   : > { %p1809_p4 = pnand %p1808_p1, %p1802_p12 }
  0x60   : > { %1812 = shalt.err (!%p1809_p4)
}
  0x61   : > { %s2641_s7 = smov 64   ;;  %s2642_s27 = sshll.u32 %s2019_s9, 8 }
  0x62   : > { %1659 = dma.hbm_to_vmem [thread:$0]  (!%p2210_p7), %s2229_s14, 256, %s2233_s26, %s2235_s25, %s2641_s7, %s2641_s7, %s2027_s13  }
  0x63   : > { %s2273_s19 = scalar_lea.hbm %s2581_s2, %s2642_s27  ;;  %s2643_s24 = sshll.u32 %s2166_s23, 4 }
  0x64   : > { %s373_s8 = scalar_lea.vmem [#allocation9], %s2643_s24  ;;  %s2029_s3 = smov [#allocation12]  }
  0x65   : > { %s382_s1 = sshll.u32 %s373_s8, 4  ;;  %s307_s22 = sshll.u32 %s2029_s3, 4  ;;  %s308_s22 = int_to_ptr.vmem [resolvable:$true] %s307_s22  ;;  %s2307_s1 = int_to_ptr.vmem [resolvable:$true] %s382_s1 }
  0x66   : > { %s1813_s10 = scalar_lea.hbm %s2583_s4, 256  ;;  %p2644_p10 = scmp.ne.s32.totalorder %s2631_s21, 0 }
  0x67   : > { %p1814_p2 = scmp.ne.s32.totalorder %s2583_s4, %s1813_s10  ;;  %p1820_p11 = scmp.lt.u32.totalorder %s1813_s10, %s2583_s4 }
  0x68   : > { %p2645_p0 = pneg %p2644_p10 }
  0x6a   : > { %p1816_p13 = pnand %p1814_p2, %p2645_p0 }
  0x6c   : > { %p1817_p6 = pneg %p1816_p13 }
  0x6e   : > { %p1822_p3 = pnand %p1820_p11, %p1817_p6 }
  0x70   : > { %1825 = shalt.err (!%p1822_p3)
}
  0x71   : > { %s1826_s3 = scalar_lea.vmem %s308_s22, 256  ;;  %p2646_p5 = pmov %p2645_p0 }
  0x72   : > { %p1827_p8 = scmp.ne.s32.totalorder %s308_s22, %s1826_s3  ;;  %p1834_p4 = scmp.lt.s32.totalorder %s308_s22, %s308_s22 }
  0x73   : > { %p1835_p7 = scmp.lt.s32.totalorder %s1826_s3, %s1826_s3 }
  0x74   : > { %p1829_p12 = pnand %p1827_p8, %p2646_p5 }
  0x75   : > { %p1836_p9 = por %p1835_p7, %p1834_p4 }
  0x76   : > { %p1830_p1 = pneg %p1829_p12 }
  0x78   : > { %p1837_p0 = pnand %p1836_p9, %p1830_p1 }
  0x7a   : > { %1840 = shalt.err (!%p1837_p0)
}
  0x7b   : > { %1652 = dma.hbm_to_vmem [thread:$0]  (!%p2644_p10), %s2583_s4, 256, %s308_s22, [#allocation11], %s2641_s7, %s2641_s7, %s2027_s13  }
  0x7c   : > { %s1469_s29 = sshll.u32 %s2166_s23, 3  ;;  %s1470_s30 = sshll.u32 %s2019_s9, 7 }
  0x7d   : > { %s2305_s17 = scalar_lea.hbm %s2579_s0, %s1470_s30  ;;  %s331_s21 = scalar_lea.vmem [#allocation4], %s1469_s29 }
  0x7e   : > { %s339_s20 = sshll.u32 %s331_s21, 4  ;;  %s328_s24 = scalar_lea.sflag [#allocation5], %s2166_s23  ;;  %s340_s20 = int_to_ptr.vmem [resolvable:$true] %s339_s20 }
  0x7f   : > { %s1841_s8 = scalar_lea.hbm %s2305_s17, 128  ;;  %p2647_p9 = scmp.ne.s32.totalorder %s2640_s16, 0 }
  0x80   : > { %p1842_p7 = scmp.ne.s32.totalorder %s2305_s17, %s1841_s8  ;;  %s1846_s26 = scalar_lea.hbm %s2579_s0, 256 }
  0x81   : > { %p1847_p13 = scmp.lt.u32.totalorder %s2305_s17, %s2579_s0  ;;  %p1848_p6 = scmp.lt.u32.totalorder %s1846_s26, %s1841_s8 }
  0x82   : > { %p1844_p2 = pnand %p1842_p7, %p2647_p9  ;;  %p1850_p3 = scmp.lt.u32.totalorder %s1841_s8, %s2305_s17 }
  0x83   : > { %p1849_p11 = por %p1848_p6, %p1847_p13 }
  0x84   : > { %p1845_p10 = pneg %p1844_p2 }
  0x85   : > { %p1851_p8 = por %p1850_p3, %p1849_p11 }
  0x87   : > { %p1852_p5 = pnand %p1851_p8, %p1845_p10 }
  0x89   : > { %1855 = shalt.err (!%p1852_p5)
}
  0x8a   : > { %s1856_s23 = scalar_lea.vmem %s340_s20, 128  ;;  %s2030_s6 = smov [#allocation4]  }
  0x8b   : > { %p1857_p12 = scmp.ne.s32.totalorder %s340_s20, %s1856_s23  ;;  %s1861_s29 = sshll.u32 %s2030_s6, 4  ;;  %s1862_s29 = int_to_ptr.vmem [resolvable:$false] %s1861_s29 }
  0x8c   : > { %s1863_s30 = scalar_lea.vmem %s1862_s29, 256  ;;  %p1864_p0 = scmp.lt.s32.totalorder %s340_s20, %s1862_s29 }
  0x8d   : > { %p1859_p1 = pnand %p1857_p12, %p2647_p9  ;;  %p1865_p7 = scmp.lt.s32.totalorder %s1863_s30, %s1856_s23 }
  0x8f   : > { %p1860_p4 = pneg %p1859_p1  ;;  %p1866_p2 = por %p1865_p7, %p1864_p0 }
  0x91   : > { %p1867_p6 = pnand %p1866_p2, %p1860_p4 }
  0x93   : > { %1870 = shalt.err (!%p1867_p6)
}
  0x94   : > { %p2648_p13 = scmp.ne.s32.totalorder %s2636_s12, 0  ;;  %s1871_s10 = scalar_lea.hbm %s2273_s19, 256 }
  0x95   : > { %p1872_p10 = scmp.ne.s32.totalorder %s2273_s19, %s1871_s10  ;;  %s1876_s8 = scalar_lea.hbm %s2581_s2, 512 }
  0x96   : > { %1656 = dma.hbm_to_vmem [thread:$0]  (!%p2648_p13), %s2305_s17, 128, %s340_s20, %s328_s24  }
  0x97   : > { %p1874_p11 = pnand %p1872_p10, %p2647_p9  ;;  %p1877_p8 = scmp.lt.u32.totalorder %s2273_s19, %s2581_s2 }
  0x98   : > { %p1878_p5 = scmp.lt.u32.totalorder %s1876_s8, %s1871_s10  ;;  %p1880_p1 = scmp.lt.u32.totalorder %s1871_s10, %s2273_s19 }
  0x99   : > { %p1875_p3 = pneg %p1874_p11 }
  0x9a   : > { %p1879_p12 = por %p1878_p5, %p1877_p8 }
  0x9c   : > { %p1881_p4 = por %p1880_p1, %p1879_p12 }
  0x9e   : > { %p1882_p0 = pnand %p1881_p4, %p1875_p3 }
  0xa0   : > { %1885 = shalt.err (!%p1882_p0)
}
  0xa1   : > { %s1886_s17 = scalar_lea.vmem %s2307_s1, 256  ;;  %s2031_s20 = smov [#allocation9]  }
  0xa2   : > { %p1887_p7 = scmp.ne.s32.totalorder %s2307_s1, %s1886_s17  ;;  %s1891_s24 = sshll.u32 %s2031_s20, 4  ;;  %s1892_s24 = int_to_ptr.vmem [resolvable:$false] %s1891_s24 }
  0xa3   : > { %s1893_s26 = scalar_lea.vmem %s1892_s24, 512  ;;  %p1894_p10 = scmp.lt.s32.totalorder %s2307_s1, %s1892_s24 }
  0xa4   : > { %p1889_p2 = pnand %p1887_p7, %p2647_p9  ;;  %p1895_p11 = scmp.lt.s32.totalorder %s1893_s26, %s1886_s17 }
  0xa6   : > { %p1890_p6 = pneg %p1889_p2  ;;  %p1896_p8 = por %p1895_p11, %p1894_p10 }
  0xa8   : > { %p1897_p5 = pnand %p1896_p8, %p1890_p6 }
  0xaa   : > { %1900 = shalt.err (!%p1897_p5)
}
  0xab   : > { %1662 = dma.hbm_to_vmem [thread:$0]  (!%p2648_p13), %s2273_s19, 256, %s2307_s1, %s2235_s25, %s2641_s7, %s2641_s7, %s2027_s13  }
  0xac   : > { %p2649_p9 = scmp.ne.s32.totalorder %s2630_s18, 0 }
  0xad   : > { %s2355_s16 = sand.u32 (!%p2649_p9), 1, %s2007_s28   ;;  %p2650_p3 = scmp.ne.s32.totalorder (!%p2649_p9), %s2625_s15, 0 }
  0xae   : > { %394 = sbr.rel (%p2649_p9) target bundleno = 3107 (0xc23), region = 48  ;;  %s1478_s3 = sshll.u32 (!%p2649_p9), %s2355_s16, 3 }
  0xaf   : > { %s397_s5 = scalar_lea.sflag (!%p2649_p9), [#allocation5], %s2355_s16  ;;  %s400_s12 = scalar_lea.vmem (!%p2649_p9), [#allocation4], %s1478_s3 }
  0xb5   : > { %1982 = dma.done.wait (%p2650_p3), %s397_s5, 128  }
  0xb6   : > { %1984 = vsyncadd (%p2650_p3), %s397_s5, 4294967168  ;;  %s405_s1 = sand.u32 1, %s2117_s11   ;;  %s1479_s18 = sshll.u32 %s2355_s16, 4 }
  0xb7   : > { %s406_s13 = scalar_lea.sflag [#allocation8], %s405_s1  ;;  %s2367_s25 = scalar_lea.vmem [#allocation7], %s1479_s18 }
  0xb8   : > { %1986 = dma.done.wait (%p2650_p3), %s406_s13, 512  }
  0xb9   : > { %1988 = vsyncadd (%p2650_p3), %s406_s13, 4294966784  ;;  %s2373_s7 = scalar_lea.vmem [#allocation9], %s1479_s18  ;;  %p2651_p13 = scmp.eq.s32.totalorder %s2117_s11, 0 }
  0xbb   : > { %1990 = dma.done.wait (%p2651_p13), [#allocation11], 512   ;;  %p2652_p12 = pmov %p2651_p13 }
  0xbc   : > { %vm483_vm0 = vcmask 261120   ;;  %v482_v0 = vld [vmem:[%s400_s12] sm:$0xff]  ;;  %v1735_v7 = vld [vmem:[#allocation10] sm:$0xff]   ;;  %v2032_v8 = vmov 0.0   ;;  %v1736_v9 = vld [vmem:[#allocation10 + $0x8] sm:$0xff]   ;;  %vm2033_vm1 = vmmov 0  }
  0xbd   : > { %1992 = vsyncadd (%p2652_p12), [#allocation11], 4294966784  ;;  %v484_v1 = vsel %vm483_vm0, %v482_v0, 0.0  ;;  %517 = vst.msk [vmem:[#allocation3] sm:$0xff] %vm483_vm0, %v482_v0  ;;  %1548 = vmatprep.subr.bf16.mxu0 %v2032_v8  ;;  %1556 = vmatprep.subr.bf16.mxu1 %v2032_v8  ;;  %v589_v10 = vld [vmem:[%s2367_s25] sm:$0xf] }
  0xbe   : > { %485 = vadd.xlane.f32.xlu0 %v484_v1  ;;  %1549 = vmatpush3.bf16.msra.mxu0 %v1735_v7  ;;  %vm591_vm2 = vcmask 64512   ;;  %s2653_s19 = sld [smem:[#allocation31_spill]]  ;;  %s2654_s29 = sld [smem:[#allocation32_spill]]  ;;  %vm515_vm3 = vcmask 257024   ;;  %v1492_v23 = vld [vmem:[%s2367_s25 + $0x4] sm:$0xf] }
  0xbf   : > { %1552 = vmatprep.mubr.msk.bf16.mxu0 %vm2033_vm1, %v2032_v8  ;;  %1550 = vmatprep.subr.bf16.mxu0 %v2032_v8  ;;  %v596_v11 = vsel %vm591_vm2, %v589_v10, 0  ;;  %v710_v27 = vsel %vm591_vm2, %v1492_v23, 0  ;;  %s2034_s30 = smov 120   ;;  %v590_v46 = vld [vmem:[%s2373_s7] sm:$0xf]  ;;  %vm654_vm4 = vcmask 1043456  }
  0xc0   : > { %1558 = vmatprep.mubr.msk.bf16.mxu1 %vm2033_vm1, %v2032_v8  ;;  %1557 = vmatpush3.bf16.xpose.msra.mxu1 %v596_v11  ;;  %v656_v47 = vsel %vm654_vm4, %v590_v46, 0  ;;  %s2035_s10 = smov 112   ;;  %s1484_s27 = sshll.u32 %s2355_s16, 5  ;;  %v1493_v55 = vld [vmem:[%s2373_s7 + $0x4] sm:$0xf] }
  0xc1   : > { %1568 = vmatprep.subr.bf16.mxu1 %v2032_v8  ;;  %s2425_s21 = scalar_lea.vmem [#allocation14], %s1484_s27  ;;  %v770_v58 = vsel %vm654_vm4, %v1493_v55, 0  ;;  %v586_v59 = vld [vmem:[#allocation12 + $0x4] sm:$0xf]  ;;  %v585_v63 = vld [vmem:[#allocation12] sm:$0xf] }
  0xc2   : > { %1551 = vmatpush3.bf16.msra.mxu0 %v1736_v9  ;;  %v817_v60 = vsel %vm654_vm4, %v586_v59, 0  ;;  %v1499_v9 = vld [vmem:[%s2367_s25 + $0x8] sm:$0xf]  ;;  %s2036_s8 = smov 104   ;;  %s2655_s22 = sld [smem:[#allocation23_spill]] }
  0xc3   : > { %1562 = vmatprep.subr.bf16.mxu0 %v2032_v8  ;;  %s2656_s14 = sld [smem:[#allocation25_spill]]  ;;  %s1269_s20 = sshll.u32 %s2425_s21, 4  ;;  %s2496_s20 = int_to_ptr.vmem [resolvable:$true] %s1269_s20 }
  0xc4   : > { %v1485_v16 = vld [vmem:[%s2653_s19] ss:$0 sm:$0xff]  ;;  %s2657_s5 = sld [smem:[#allocation34_spill]]  ;;  %s1239_s1 = scalar_lea.sflag [#allocation15], %s2355_s16 }
  0xc5   : > { %v1486_v18 = vld [vmem:[%s2654_s29] ss:$0 sm:$0xff]  ;;  %s1901_s18 = scalar_lea.vmem %s2496_s20, 512  ;;  %s2037_s13 = smov [#allocation14]  }
  0xc6   : > { %p1902_p1 = scmp.ne.s32.totalorder %s2496_s20, %s1901_s18 }
  0xc8   : > { %s1520_s17 = sshll.u32 %s2655_s22, 9 }
  0xc9   : > { %p2658_p4 = scmp.ne.s32.totalorder %s2656_s14, 0 }
  0xca   : > { %s2494_s12 = scalar_lea.hbm %s2657_s5, %s1520_s17 }
  0xcb   : > { %p1903_p0 = pnand %p1902_p1, %p2658_p4 }
  0xcd   : > { %p1904_p7 = pneg %p1903_p0 }
 0x14b   : > { %v486_v2 = vpop.xlane.xlu0 %485 }
 0x14c   : > { %v488_v3 = vmul.f32 0.03125, %v486_v2  ;;  %v863_v2 = vsel %vm654_vm4, %v585_v63, 0 }
 0x14e   : > { %v489_v4 = vsub.f32 %v482_v0, %v488_v3 }
 0x150   : > { %v490_v5 = vmul.f32 %v489_v4, %v489_v4 }
 0x152   : > { %v491_v6 = vsel %vm483_vm0, %v490_v5, 0.0 }
 0x153   : > { %492 = vadd.xlane.f32.xlu0 %v491_v6 }
 0x1e0   : > { %v493_v12 = vpop.xlane.xlu0 %492 }
 0x1e1   : > { %v494_v13 = vmul.f32 0.03125, %v493_v12 }
 0x1e3   : > { %v495_v14 = vadd.f32 1e-06, %v494_v13  ;;  %v915_v13 = vsel %vm591_vm2, %v1499_v9, 0 }
 0x1e5   : > { %1737 = vrsqrt.f32 %v495_v14 }
 0x1ef   : > { %v1738_v15 = vpop.eup %1737 }
 0x1f0   : > { %v497_v17 = vmul.f32 %v1738_v15, %v489_v4 }
 0x1f2   : > { %v505_v19 = vmul.f32 %v1485_v16, %v497_v17 }
 0x1f4   : > { %v513_v20 = vadd.f32 %v1486_v18, %v505_v19 }
 0x1f6   : > { %v514_v21 = vpack.c.bf16 %v513_v20, %v513_v20 }
 0x1f8   : > { %516 = vst.msk [vmem:[#allocation2] sm:$0xf] %vm515_vm3, %v514_v21 }
 0x1ff   : > { %v518_v22 = vld [vmem:[#allocation2] sm:$0xf] }
 0x200   : > { %1553 = vmatmul.mubr.msk.bf16.vlgmr.msra.gmra.mrb[0].mxu0 %vm483_vm0, %v518_v22 }
 0x201   : > { %1564 = vmatprep.mubr.msk.bf16.mxu0 %vm2033_vm1, %v2032_v8  ;;  %1563 = vmatpush3.bf16.msra.mxu0 %v656_v47 }
 0x202   : > { %1574 = vmatprep.subr.bf16.mxu0 %v2032_v8 }
 0x2d3   : > { %v576_v24 = vpop.f32.mrb[0].mxu0 }
 0x2d4   : > { %v2403_v25 = vpack.c.bf16 %v576_v24, %v576_v24  ;;  %v1554_v26 = vpop.f32.mrb[1].mxu0 }
 0x2d5   : > { %v579_v28 = vpop.f32.mrb[2].mxu0 }
 0x2d6   : > { %704 = vrot.lane.b32.xlu1 %v2403_v25, %s2034_s30  ;;  %v1555_v29 = vpop.f32.mrb[3].mxu0  ;;  %1559 = vmatmul.mubr.msk.bf16.vlgmr.msra.gmra.mrb[0].mxu1 %vm591_vm2, %v2403_v25 }
 0x2d7   : > { %1569 = vmatpush3.bf16.xpose.msra.mxu1 %v710_v27  ;;  %1570 = vmatprep.mubr.msk.bf16.mxu1 %vm2033_vm1, %v2032_v8 }
 0x2d8   : > { %1580 = vmatprep.subr.bf16.mxu1 %v2032_v8 }
 0x348   : > { %v705_v30 = vpop.permute.xlu1 %704 }
 0x349   : > { %1571 = vmatmul.mubr.msk.bf16.vlgmr.msra.gmra.mrb[4].mxu1 %vm591_vm2, %v705_v30 }
 0x34a   : > { %1582 = vmatprep.mubr.msk.bf16.mxu1 %vm2033_vm1, %v2032_v8  ;;  %1581 = vmatpush3.bf16.msra.mxu1 %v817_v60 }
 0x34b   : > { %1592 = vmatprep.subr.bf16.mxu1 %v2032_v8 }
 0x3a9   : > { %v632_v31 = vpop.f32.mrb[0].mxu1 }
 0x3aa   : > { %v1560_v32 = vpop.f32.mrb[1].mxu1  ;;  %v638_v33 = vsel %vm591_vm2, %v632_v31, -inf }
 0x3ab   : > { %639 = vmax.xlane.f32.xlu1 %v638_v33  ;;  %v635_v34 = vpop.f32.mrb[2].mxu1 }
 0x3ac   : > { %v1561_v35 = vpop.f32.mrb[3].mxu1 }
 0x41c   : > { %v746_v36 = vpop.f32.mrb[4].mxu1 }
 0x41d   : > { %v1572_v37 = vpop.f32.mrb[5].mxu1  ;;  %v752_v38 = vsel %vm591_vm2, %v746_v36, -inf }
 0x41e   : > { %753 = vmax.xlane.f32.xlu0 %v752_v38  ;;  %v749_v39 = vpop.f32.mrb[6].mxu1  ;;  %v1500_v37 = vld [vmem:[%s2373_s7 + $0x8] sm:$0xf] }
 0x41f   : > { %v1573_v40 = vpop.f32.mrb[7].mxu1  ;;  %v975_v38 = vsel %vm654_vm4, %v1500_v37, 0 }
 0x438   : > { %v640_v41 = vpop.xlane.xlu1 %639 }
 0x439   : > { %v641_v42 = vsub.f32 %v632_v31, %v640_v41  ;;  %v1505_v41 = vld [vmem:[%s2367_s25 + $0xc] sm:$0xf]  ;;  %s1905_s25 = sshll.u32 %s2037_s13, 4  ;;  %s1906_s25 = int_to_ptr.vmem [resolvable:$false] %s1905_s25 }
 0x43a   : > { %p1908_p2 = scmp.lt.s32.totalorder %s2496_s20, %s1906_s25 }
 0x43b   : > { %v642_v43 = vmul.f32 1.442695, %v641_v42 }
 0x43d   : > { %1739 = vpow2.f32 %v642_v43  ;;  %v1075_v43 = vsel %vm591_vm2, %v1505_v41, 0 }
 0x447   : > { %v1740_v44 = vpop.eup %1739 }
 0x448   : > { %v644_v45 = vsel %vm591_vm2, %v1740_v44, 0.0 }
 0x449   : > { %645 = vadd.xlane.f32.xlu0 %v644_v45  ;;  %v587_v45 = vld [vmem:[#allocation12 + $0x8] sm:$0xf] }
 0x44a   : > { %v1022_v46 = vsel %vm654_vm4, %v587_v45, 0 }
 0x4ab   : > { %v754_v48 = vpop.xlane.xlu0 %753 }
 0x4ac   : > { %v755_v49 = vsub.f32 %v746_v36, %v754_v48 }
 0x4ae   : > { %v756_v50 = vmul.f32 1.442695, %v755_v49 }
 0x4b0   : > { %1741 = vpow2.f32 %v756_v50 }
 0x4ba   : > { %v1742_v51 = vpop.eup %1741 }
 0x4bb   : > { %v758_v52 = vsel %vm591_vm2, %v1742_v51, 0.0 }
 0x4bc   : > { %759 = vadd.xlane.f32.xlu0 %v758_v52 }
 0x4d2   : > { %909 = vrot.lane.b32.xlu0 %v2403_v25, %s2035_s10 }
 0x4d6   : > { %v646_v53 = vpop.xlane.xlu0 %645 }
 0x4d7   : > { %1743 = vrcp.f32 %v646_v53 }
 0x4e1   : > { %v1744_v54 = vpop.eup %1743 }
 0x4e2   : > { %v648_v56 = vmul.f32 %v1744_v54, %v1740_v44 }
 0x4e4   : > { %649 = vst.msk [vmem:[%s2425_s21] sm:$0xff] %vm591_vm2, %v648_v56  ;;  %v650_v57 = vpack.c.bf16 %v648_v56, %v648_v56 }
 0x4e6   : > { %1565 = vmatmul.mubr.msk.bf16.vlgmr.msra.gmra.mrb[4].mxu0 %vm591_vm2, %v650_v57 }
 0x4e7   : > { %1575 = vmatpush3.bf16.msra.mxu0 %v770_v58  ;;  %1576 = vmatprep.mubr.msk.bf16.mxu0 %vm2033_vm1, %v2032_v8 }
 0x4e8   : > { %1586 = vmatprep.subr.bf16.mxu0 %v2032_v8 }
 0x549   : > { %v760_v61 = vpop.xlane.xlu0 %759 }
 0x54a   : > { %1745 = vrcp.f32 %v760_v61 }
 0x54d   : > { %v910_v16 = vpop.permute.xlu0 %909 }
 0x554   : > { %v1746_v62 = vpop.eup %1745 }
 0x555   : > { %v762_v0 = vmul.f32 %v1746_v62, %v1742_v51  ;;  %v1506_v62 = vld [vmem:[%s2373_s7 + $0xc] sm:$0xf]  ;;  %s1907_s7 = scalar_lea.vmem %s1906_s25, 1024 }
 0x556   : > { %v1135_v63 = vsel %vm654_vm4, %v1506_v62, 0  ;;  %p1909_p6 = scmp.lt.s32.totalorder %s1907_s7, %s1901_s18 }
 0x557   : > { %1495 = vst.msk [vmem:[%s2425_s21 + $0x8] sm:$0xff] %vm591_vm2, %v762_v0  ;;  %v765_v1 = vpack.c.bf16 %v762_v0, %v762_v0 }
 0x558   : > { %p1910_p10 = por %p1909_p6, %p1908_p2 }
 0x559   : > { %1577 = vmatmul.mubr.msk.bf16.vlgmr.msra.gmra.mrb[8].mxu0 %vm591_vm2, %v765_v1 }
 0x55a   : > { %1587 = vmatpush3.bf16.msra.mxu0 %v863_v2  ;;  %1588 = vmatprep.mubr.msk.bf16.mxu0 %vm2033_vm1, %v2032_v8  ;;  %p1911_p11 = pnand %p1910_p10, %p1904_p7 }
 0x55b   : > { %1598 = vmatprep.subr.bf16.mxu0 %v2032_v8 }
 0x5b9   : > { %v692_v3 = vpop.f32.mrb[4].mxu0 }
 0x5ba   : > { %v698_v4 = vpack.c.bf16 %v692_v3, %v692_v3  ;;  %v1566_v5 = vpop.f32.mrb[5].mxu0 }
 0x5bb   : > { %v695_v6 = vpop.f32.mrb[6].mxu0 }
 0x5bc   : > { %v1567_v7 = vpop.f32.mrb[7].mxu0  ;;  %1589 = vmatmul.mubr.msk.bf16.vlgmr.msra.gmra.mrb[12].mxu0 %vm591_vm2, %v698_v4 }
 0x5bd   : > { %1600 = vmatprep.mubr.msk.bf16.mxu0 %vm2033_vm1, %v2032_v8  ;;  %1599 = vmatpush3.bf16.msra.mxu0 %v975_v38 }
 0x5be   : > { %1610 = vmatprep.subr.bf16.mxu0 %v2032_v8 }
 0x62c   : > { %v806_v10 = vpop.f32.mrb[8].mxu0 }
 0x62d   : > { %v812_v11 = vpack.c.bf16 %v806_v10, %v806_v10  ;;  %v1578_v12 = vpop.f32.mrb[9].mxu0 }
 0x62e   : > { %v809_v14 = vpop.f32.mrb[10].mxu0 }
 0x62f   : > { %v1579_v15 = vpop.f32.mrb[11].mxu0  ;;  %1583 = vmatmul.mubr.msk.bf16.vlgmr.msra.gmra.mrb[8].mxu1 %vm591_vm2, %v812_v11 }
 0x630   : > { %1593 = vmatpush3.bf16.xpose.msra.mxu1 %v915_v13  ;;  %1594 = vmatprep.mubr.msk.bf16.mxu1 %vm2033_vm1, %v2032_v8 }
 0x631   : > { %1604 = vmatprep.subr.bf16.mxu1 %v2032_v8 }
 0x637   : > { %1595 = vmatmul.mubr.msk.bf16.vlgmr.msra.gmra.mrb[12].mxu1 %vm591_vm2, %v910_v16 }
 0x638   : > { %1606 = vmatprep.mubr.msk.bf16.mxu1 %vm2033_vm1, %v2032_v8  ;;  %1605 = vmatpush3.bf16.msra.mxu1 %v1022_v46 }
 0x639   : > { %1616 = vmatprep.subr.bf16.mxu1 %v2032_v8 }
 0x68f   : > { %v899_v17 = vpop.f32.mrb[12].mxu0 }
 0x690   : > { %v1590_v18 = vpop.f32.mrb[13].mxu0 }
 0x691   : > { %v902_v19 = vpop.f32.mrb[14].mxu0 }
 0x692   : > { %v1591_v20 = vpop.f32.mrb[15].mxu0 }
 0x702   : > { %v853_v21 = vpop.f32.mrb[8].mxu1 }
 0x703   : > { %v2455_v22 = vadd.f32 %v899_v17, %v853_v21  ;;  %v1584_v23 = vpop.f32.mrb[9].mxu1 }
 0x704   : > { %v856_v24 = vpop.f32.mrb[10].mxu1 }
 0x705   : > { %v1585_v26 = vpop.f32.mrb[11].mxu1 }
 0x70a   : > { %v951_v27 = vpop.f32.mrb[12].mxu1 }
 0x70b   : > { %v1596_v28 = vpop.f32.mrb[13].mxu1  ;;  %v957_v29 = vsel %vm591_vm2, %v951_v27, -inf }
 0x70c   : > { %958 = vmax.xlane.f32.xlu1 %v957_v29  ;;  %v954_v30 = vpop.f32.mrb[14].mxu1 }
 0x70d   : > { %v1597_v31 = vpop.f32.mrb[15].mxu1 }
 0x71d   : > { %1069 = vrot.lane.b32.xlu1 %v2403_v25, %s2036_s8 }
 0x799   : > { %v959_v32 = vpop.xlane.xlu1 %958 }
 0x79a   : > { %v960_v33 = vsub.f32 %v951_v27, %v959_v32 }
 0x79c   : > { %v961_v34 = vmul.f32 1.442695, %v960_v33 }
 0x79d   : > { %v1070_v44 = vpop.permute.xlu1 %1069 }
 0x79e   : > { %1747 = vpow2.f32 %v961_v34 }
 0x7a8   : > { %v1748_v35 = vpop.eup %1747 }
 0x7a9   : > { %v963_v36 = vsel %vm591_vm2, %v1748_v35, 0.0 }
 0x7aa   : > { %964 = vadd.xlane.f32.xlu0 %v963_v36 }
 0x837   : > { %v965_v39 = vpop.xlane.xlu0 %964 }
 0x838   : > { %1749 = vrcp.f32 %v965_v39 }
 0x842   : > { %v1750_v40 = vpop.eup %1749 }
 0x843   : > { %v967_v25 = vmul.f32 %v1750_v40, %v1748_v35 }
 0x845   : > { %1502 = vst.msk [vmem:[%s2425_s21 + $0x10] sm:$0xff] %vm591_vm2, %v967_v25  ;;  %v970_v42 = vpack.c.bf16 %v967_v25, %v967_v25 }
 0x847   : > { %1601 = vmatmul.mubr.msk.bf16.vlgmr.msra.gmra.mrb[16].mxu0 %vm591_vm2, %v970_v42 }
 0x848   : > { %1611 = vmatpush3.bf16.xpose.msra.mxu0 %v1075_v43  ;;  %1612 = vmatprep.mubr.msk.bf16.mxu0 %vm2033_vm1, %v2032_v8 }
 0x849   : > { %1622 = vmatprep.subr.bf16.mxu0 %v2032_v8 }
 0x84f   : > { %1613 = vmatmul.mubr.msk.bf16.vlgmr.msra.gmra.mrb[20].mxu0 %vm591_vm2, %v1070_v44 }
 0x850   : > { %1624 = vmatprep.mubr.msk.bf16.mxu0 %vm2033_vm1, %v2032_v8 }
 0x91a   : > { %v1011_v47 = vpop.f32.mrb[16].mxu0 }
 0x91b   : > { %v1017_v48 = vpack.c.bf16 %v1011_v47, %v1011_v47  ;;  %v1602_v49 = vpop.f32.mrb[17].mxu0 }
 0x91c   : > { %v1014_v50 = vpop.f32.mrb[18].mxu0 }
 0x91d   : > { %v1603_v51 = vpop.f32.mrb[19].mxu0  ;;  %1607 = vmatmul.mubr.msk.bf16.vlgmr.msra.gmra.mrb[16].mxu1 %vm591_vm2, %v1017_v48 }
 0x91e   : > { %1618 = vmatprep.mubr.msk.bf16.mxu1 %vm2033_vm1, %v2032_v8  ;;  %1617 = vmatpush3.bf16.msra.mxu1 %v1135_v63  ;;  %v588_v8 = vld [vmem:[#allocation12 + $0xc] sm:$0xf] }
 0x91f   : > { %v1182_v0 = vsel %vm654_vm4, %v588_v8, 0 }
 0x920   : > { %1623 = vmatpush3.bf16.msra.mxu0 %v1182_v0 }
 0x922   : > { %v1111_v52 = vpop.f32.mrb[20].mxu0 }
 0x923   : > { %v1614_v53 = vpop.f32.mrb[21].mxu0  ;;  %v1117_v54 = vsel %vm591_vm2, %v1111_v52, -inf }
 0x924   : > { %1118 = vmax.xlane.f32.xlu1 %v1117_v54  ;;  %v1114_v55 = vpop.f32.mrb[22].mxu0 }
 0x925   : > { %v1615_v56 = vpop.f32.mrb[23].mxu0 }
 0x9b1   : > { %v1119_v57 = vpop.xlane.xlu1 %1118 }
 0x9b2   : > { %v1120_v58 = vsub.f32 %v1111_v52, %v1119_v57 }
 0x9b4   : > { %v1121_v59 = vmul.f32 1.442695, %v1120_v58 }
 0x9b6   : > { %1751 = vpow2.f32 %v1121_v59 }
 0x9c0   : > { %v1752_v60 = vpop.eup %1751 }
 0x9c1   : > { %v1123_v61 = vsel %vm591_vm2, %v1752_v60, 0.0 }
 0x9c2   : > { %1124 = vadd.xlane.f32.xlu0 %v1123_v61 }
 0x9f0   : > { %v1058_v1 = vpop.f32.mrb[16].mxu1 }
 0x9f1   : > { %v1064_v2 = vadd.f32 %v1058_v1, %v2455_v22  ;;  %v1608_v3 = vpop.f32.mrb[17].mxu1 }
 0x9f2   : > { %v1061_v4 = vpop.f32.mrb[18].mxu1 }
 0x9f3   : > { %v1609_v5 = vpop.f32.mrb[19].mxu1 }
 0xa4f   : > { %v1125_v6 = vpop.xlane.xlu0 %1124 }
 0xa50   : > { %1753 = vrcp.f32 %v1125_v6 }
 0xa5a   : > { %v1754_v7 = vpop.eup %1753 }
 0xa5b   : > { %v1127_v9 = vmul.f32 %v1754_v7, %v1752_v60 }
 0xa5d   : > { %1508 = vst.msk [vmem:[%s2425_s21 + $0x18] sm:$0xff] %vm591_vm2, %v1127_v9  ;;  %v1130_v10 = vpack.c.bf16 %v1127_v9, %v1127_v9 }
 0xa5f   : > { %1619 = vmatmul.mubr.msk.bf16.vlgmr.msra.gmra.mrb[20].mxu1 %vm591_vm2, %v1130_v10 }
 0xb32   : > { %v1171_v11 = vpop.f32.mrb[20].mxu1 }
 0xb33   : > { %v1177_v12 = vpack.c.bf16 %v1171_v11, %v1171_v11  ;;  %v1620_v13 = vpop.f32.mrb[21].mxu1 }
 0xb34   : > { %v1174_v14 = vpop.f32.mrb[22].mxu1 }
 0xb35   : > { %v1621_v15 = vpop.f32.mrb[23].mxu1  ;;  %1625 = vmatmul.mubr.msk.bf16.vlgmr.msra.gmra.mrb[24].mxu0 %vm591_vm2, %v1177_v12 }
 0xb36   : > { %1914 = shalt.err (!%p1911_p11)
}
 0xb37   : > { %s1915_s11 = scalar_lea.hbm %s2494_s12, 512  ;;  %s1919_s23 = scalar_lea.hbm %s2657_s5, 1024 }
 0xb38   : > { %p1916_p8 = scmp.ne.s32.totalorder %s2494_s12, %s1915_s11  ;;  %p1920_p3 = scmp.lt.u32.totalorder %s2494_s12, %s2657_s5 }
 0xb39   : > { %p1921_p13 = scmp.lt.u32.totalorder %s1919_s23, %s1915_s11  ;;  %p1923_p1 = scmp.lt.u32.totalorder %s1915_s11, %s2494_s12 }
 0xb3a   : > { %p1917_p5 = pnand %p1916_p8, %p2658_p4 }
 0xb3b   : > { %p1922_p12 = por %p1921_p13, %p1920_p3 }
 0xb3c   : > { %p1918_p9 = pneg %p1917_p5 }
 0xb3d   : > { %p1924_p0 = por %p1923_p1, %p1922_p12 }
 0xb3f   : > { %p1925_p7 = pnand %p1924_p0, %p1918_p9 }
 0xb41   : > { %1928 = shalt.err (!%p1925_p7)
}
 0xb42   : > { %s2038_s30 = smov 128   ;;  %s2039_s10 = smov 8   ;;  %v1225_v17 = vld [vmem:[#allocation3] sm:$0xff] }
 0xb43   : > { %1643 = dma.vmem_to_hbm [thread:$0]  (%p2658_p4), %s2496_s20, 512, %s2494_s12, %s1239_s1, %s2038_s30, %s2038_s30, %s2039_s10  }
 0xb44   : > { %s1513_s27 = sshll.u32 %s2655_s22, 7  ;;  %s466_s21 = scalar_lea.vmem [#allocation13], %s1478_s3 }
 0xb45   : > { %s1253_s8 = sshll.u32 %s466_s21, 4  ;;  %s2659_s26 = sld [smem:[#allocation33_spill]]  ;;  %s2531_s8 = int_to_ptr.vmem [resolvable:$true] %s1253_s8 }
 0xb46   : > { %s1234_s20 = scalar_lea.sflag [#allocation6], %s2355_s16  ;;  %s1929_s12 = scalar_lea.vmem %s2531_s8, 128 }
 0xb47   : > { %p1930_p2 = scmp.ne.s32.totalorder %s2531_s8, %s1929_s12  ;;  %s2040_s3 = smov [#allocation13]  }
 0xb48   : > { %s1933_s22 = sshll.u32 %s2040_s3, 4  ;;  %s1934_s22 = int_to_ptr.vmem [resolvable:$false] %s1933_s22 }
 0xb49   : > { %p1931_p6 = pnand %p1930_p2, %p2658_p4  ;;  %s1935_s1 = scalar_lea.vmem %s1934_s22, 256 }
 0xb4a   : > { %p1936_p11 = scmp.lt.s32.totalorder %s2531_s8, %s1934_s22  ;;  %p1937_p8 = scmp.lt.s32.totalorder %s1935_s1, %s1929_s12 }
 0xb4b   : > { %s2529_s18 = scalar_lea.hbm %s2659_s26, %s1513_s27  ;;  %p1932_p10 = pneg %p1931_p6 }
 0xb4c   : > { %p1938_p5 = por %p1937_p8, %p1936_p11 }
 0xb4e   : > { %p1939_p9 = pnand %p1938_p5, %p1932_p10 }
 0xc08   : > { %v1218_v16 = vpop.f32.mrb[24].mxu0 }
 0xc09   : > { %v1224_v18 = vadd.f32 %v1218_v16, %v1064_v2  ;;  %v1626_v19 = vpop.f32.mrb[25].mxu0 }
 0xc0a   : > { %v1221_v20 = vpop.f32.mrb[26].mxu0 }
 0xc0b   : > { %v1226_v21 = vadd.f32 %v1225_v17, %v1224_v18  ;;  %v1627_v22 = vpop.f32.mrb[27].mxu0 }
 0xc0d   : > { %1227 = vst.msk [vmem:[#allocation3] sm:$0xff] %vm483_vm0, %v1226_v21 }
 0xc14   : > { %v1231_v23 = vld [vmem:[#allocation3] sm:$0xff] }
 0xc15   : > { %1232 = vst.msk [vmem:[%s466_s21] sm:$0xff] %vm483_vm0, %v1231_v23 }
 0xc16   : > { %1942 = shalt.err (!%p1939_p9)
}
 0xc17   : > { %s1943_s16 = scalar_lea.hbm %s2529_s18, 128  ;;  %s1947_s7 = scalar_lea.hbm %s2659_s26, 256 }
 0xc18   : > { %p1944_p3 = scmp.ne.s32.totalorder %s2529_s18, %s1943_s16  ;;  %p1948_p1 = scmp.lt.u32.totalorder %s2529_s18, %s2659_s26 }
 0xc19   : > { %p1949_p0 = scmp.lt.u32.totalorder %s1947_s7, %s1943_s16  ;;  %p1951_p2 = scmp.lt.u32.totalorder %s1943_s16, %s2529_s18 }
 0xc1a   : > { %p1945_p13 = pnand %p1944_p3, %p2658_p4 }
 0xc1b   : > { %p1950_p7 = por %p1949_p0, %p1948_p1 }
 0xc1c   : > { %p1946_p12 = pneg %p1945_p13 }
 0xc1d   : > { %p1952_p6 = por %p1951_p2, %p1950_p7 }
 0xc1f   : > { %p1953_p10 = pnand %p1952_p6, %p1946_p12 }
 0xc21   : > { %1956 = shalt.err (!%p1953_p10)
}
 0xc22   : > { %1642 = dma.vmem_to_hbm [thread:$0]  (%p2658_p4), %s2531_s8, 128, %s2529_s18, %s1234_s20  }
 0xc23 PF: > { %s2660_s19 = sld [smem:[#allocation21_spill]]  ;;  %s2661_s23 = sld [smem:[#allocation26_spill]] }
 0xc24   : > { %s2662_s6 = sld [smem:[#allocation24_spill]] }
 0xc29   : > { %s1284_s29 = sand.u32 1, %s2660_s19   ;;  %p2663_p11 = scmp.ne.s32.totalorder %s2661_s23, 0 }
 0xc2a   : > { %p2664_p8 = scmp.ge.s32.totalorder %s2662_s6, 2  ;;  %s1285_s30 = scalar_lea.sflag [#allocation6], %s1284_s29 }
 0xc2c   : > { %p1664_p5 = pnand %p2664_p8, %p2663_p11 }
 0xc2e   : > { %1994 = dma.done.wait (!%p1664_p5), %s1285_s30, 128  }
 0xc2f   : > { %1996 = vsyncadd (!%p1664_p5), %s1285_s30, 4294967168  ;;  %s1294_s10 = scalar_lea.sflag [#allocation15], %s1284_s29 }
 0xc30   : > { %1998 = dma.done.wait (!%p1664_p5), %s1294_s10, 512  }
 0xc31   : > { %2000 = vsyncadd (!%p1664_p5), %s1294_s10, 4294966784  ;;  %s32_s10 = sadd.s32 1, %s2662_s6   ;;  %s2665_s14 = sld [smem:[#allocation22_spill]] }
 0xc32   : > { %p29_p9 = scmp.ge.s32.totalorder %s32_s10, 4   ;;  %s2666_s29 = sld [smem:[#allocation28_spill]] }
 0xc33   : > { %s2667_s21 = sld [smem:[#allocation27_spill]]  ;;  %s2668_s27 = smov %s2007_s28 }
 0xc34   : > { %s2670_s30 = smov %s2019_s9  ;;  %31 = sbr.rel (!%p29_p9) target bundleno = 18 (0x12), region = 161 }
 0xc37   : > { %s2669_s28 = smov %s2665_s14 }
 0xc39   : > { %s2671_s9 = smov %s2667_s21 }
 0xc3b   :  { %1299 = vsyncpa [#allocation5], 1 }
 0xc3c   :  { %1301 = vsyncpa [#allocation5 + $0x1], 1 }
 0xc3d   :  { %1302 = vsyncpa [#allocation8], 1 }
 0xc3e   :  { %1304 = vsyncpa [#allocation8 + $0x1], 1 }
 0xc3f   :  { %1305 = vsyncpa [#allocation11], 1 }
 0xc40   :  { %1306 = vsyncpa [#allocation6], 1 }
 0xc41   :  { %1308 = vsyncpa [#allocation6 + $0x1], 1 }
 0xc42   :  { %1309 = vsyncpa [#allocation15], 1 }
 0xc43   :  { %1311 = vsyncpa [#allocation15 + $0x1], 1 }

</bundles_post_ra>
